<compile_context>
chip_gen: v7x
topology: tpu7x:2x2x1
jax: 0.10.0
libtpu: 0.0.40
codegen_flags: <defaults>
</compile_context>

<pallas_src>
import functools
import math

import jax
import jax.numpy as jnp
from jax.experimental import pallas as pl
from jax.experimental.pallas import tpu as pltpu


# ---------------------------------------------------------------------------
# Kernel bodies
# ---------------------------------------------------------------------------


def _lstm_gates(x, h, c, w_ref, wco_ref, b_ref):
    """One LSTM-cell update on in-register tiles; returns f32 (h_new, c_new).

    w_ref  : (3H, 4H) packed weights, rows [x ; h ; c], cols [i | f | c~ | o]
             (the c -> c~ and c -> o column blocks are zero).
    wco_ref: (H, H)   o-gate peephole on the *new* cell state.
    b_ref  : (1, 4H)  pre-summed per-gate biases (kept f32).
    """
    H = wco_ref.shape[-1]
    w_dt = w_ref.dtype  # feed the MXU in the packed-weight dtype (e.g. bf16)

    # Accumulating dots against sublane-aligned weight row slices (no concat,
    # no separate peephole matmul); f32 accumulation on the MXU.
    gates = jnp.dot(x.astype(w_dt), w_ref[0:H, :],
                    preferred_element_type=jnp.float32)
    gates += jnp.dot(h.astype(w_dt), w_ref[H:2 * H, :],
                     preferred_element_type=jnp.float32)
    gates += jnp.dot(c.astype(w_dt), w_ref[2 * H:3 * H, :],
                     preferred_element_type=jnp.float32)
    gates += b_ref[...].astype(jnp.float32)

    # Keep H a multiple of 128 so these per-gate lane slices stay vreg-aligned.
    c_f32 = c.astype(jnp.float32)
    i = jax.nn.sigmoid(gates[:, 0:H])
    f = jax.nn.sigmoid(gates[:, H:2 * H])
    c_new = f * c_f32 + i * jnp.tanh(gates[:, 2 * H:3 * H])

    # o-gate peephole uses the *new* cell state (matches the PyTorch forward).
    o = jax.nn.sigmoid(
        gates[:, 3 * H:4 * H]
        + jnp.dot(c_new.astype(w_dt), wco_ref[...],
                  preferred_element_type=jnp.float32))
    h_new = o * jnp.tanh(c_new)
    return h_new, c_new


def _lstm_cell_kernel(x_ref, h_ref, c_ref, w_ref, wco_ref, b_ref,
                      h_out_ref, c_out_ref):
    """Single-step LSTM cell on one batch tile."""
    h_new, c_new = _lstm_gates(x_ref[...], h_ref[...], c_ref[...],
                               w_ref, wco_ref, b_ref)
    h_out_ref[...] = h_new.astype(h_out_ref.dtype)
    c_out_ref[...] = c_new.astype(c_out_ref.dtype)


def _lstm_seq_kernel(x_ref, h0_ref, c0_ref, w_ref, wco_ref, b_ref,
                     h_out_ref, c_out_ref, h_scr, c_scr):
    """T timesteps on the inner ("arbitrary") grid axis.

    Weights have a constant block index (VMEM-resident across steps); h/c are
    carried in f32 VMEM scratch; outputs written only at the last step.
    """
    t = pl.program_id(1)

    @pl.when(t == 0)
    def _():
        h_scr[...] = h0_ref[...].astype(jnp.float32)
        c_scr[...] = c0_ref[...].astype(jnp.float32)

    h_new, c_new = _lstm_gates(x_ref[...], h_scr[...], c_scr[...],
                               w_ref, wco_ref, b_ref)
    h_scr[...] = h_new
    c_scr[...] = c_new

    @pl.when(t == pl.num_programs(1) - 1)
    def _():
        h_out_ref[...] = h_new.astype(h_out_ref.dtype)
        c_out_ref[...] = c_new.astype(c_out_ref.dtype)


# ---------------------------------------------------------------------------
# Wrappers
# ---------------------------------------------------------------------------


def _round_up(x, m):
    return ((x + m - 1) // m) * m


def _pick_block_m(batch, requested):
    """Sublane-aligned batch tile; keep >=2 grid steps when the batch allows it
    so the "parallel" axis can feed both v7x TensorCores (v5e/v6e: 1 TC)."""
    if batch >= 2 * requested:
        return requested
    if batch >= 16:
        return _round_up((batch + 1) // 2, 8)
    return _round_up(max(batch, 1), 8)


def _pad_batch(a, b_pad):
    b = a.shape[-2]
    if b == b_pad:
        return a
    pad = [(0, 0)] * a.ndim
    pad[-2] = (0, b_pad - b)
    return jnp.pad(a, pad)


@functools.partial(jax.jit, static_argnames=("block_m",))
def lstm_cell(x, h, c, w_all, w_co, b_gates, *, block_m=512):
    """Single LSTM-cell step (== the PyTorch module's forward). x/h/c: (B, H)."""
    B, H = x.shape
    assert w_all.shape == (3 * H, 4 * H)
    assert w_co.shape == (H, H)
    assert b_gates.shape == (1, 4 * H)

    bm = _pick_block_m(B, block_m)
    b_pad = _round_up(B, bm)
    x = _pad_batch(x, b_pad)
    h = _pad_batch(h, b_pad)
    c = _pad_batch(c, b_pad)

    act_spec = pl.BlockSpec((bm, H), lambda m: (m, 0))
    # Constant-index blocks: weights/biases stay VMEM-resident across the grid.
    # TODO(synk): single-buffer these (pipeline_mode=pl.Buffered(1)) once H
    # grows large enough that double-buffered weights pressure VMEM (v7x/v5e).
    w_spec = pl.BlockSpec((3 * H, 4 * H), lambda m: (0, 0))
    wco_spec = pl.BlockSpec((H, H), lambda m: (0, 0))
    b_spec = pl.BlockSpec((1, 4 * H), lambda m: (0, 0))

    h_out, c_out = pl.pallas_call(
        _lstm_cell_kernel,
        out_shape=(
            jax.ShapeDtypeStruct((b_pad, H), h.dtype),
            jax.ShapeDtypeStruct((b_pad, H), c.dtype),
        ),
        grid=(b_pad // bm,),
        in_specs=[act_spec, act_spec, act_spec, w_spec, wco_spec, b_spec],
        out_specs=(act_spec, act_spec),
        # Recurrent state is updated in place when the cell is scan-carried.
        input_output_aliases={1: 0, 2: 1},
        compiler_params=pltpu.CompilerParams(
            dimension_semantics=("parallel",),
        ),
    )(x, h, c, w_all, w_co, b_gates)
    return h_out[:B], c_out[:B]


@functools.partial(jax.jit, static_argnames=("block_m",))
def lstm_sequence(xs, h0, c0, w_all, w_co, b_gates, *, block_m=512):
    """Apply the cell over xs[t], t = 0..T-1, inside ONE pallas_call.

    xs: (T, B, H); h0/c0: (B, H).  Returns (h_T, c_T).  Weights stay VMEM
    resident across all T steps, h/c are carried in f32 VMEM scratch.
    """
    T, B, H = xs.shape
    assert w_all.shape == (3 * H, 4 * H)
    assert w_co.shape == (H, H)
    assert b_gates.shape == (1, 4 * H)

    bm = _pick_block_m(B, block_m)
    b_pad = _round_up(B, bm)
    xs = _pad_batch(xs, b_pad)
    h0 = _pad_batch(h0, b_pad)
    c0 = _pad_batch(c0, b_pad)

    x_spec = pl.BlockSpec((None, bm, H), lambda m, t: (t, m, 0))
    state_spec = pl.BlockSpec((bm, H), lambda m, t: (m, 0))
    w_spec = pl.BlockSpec((3 * H, 4 * H), lambda m, t: (0, 0))
    wco_spec = pl.BlockSpec((H, H), lambda m, t: (0, 0))
    b_spec = pl.BlockSpec((1, 4 * H), lambda m, t: (0, 0))

    h_t, c_t = pl.pallas_call(
        _lstm_seq_kernel,
        out_shape=(
            jax.ShapeDtypeStruct((b_pad, H), h0.dtype),
            jax.ShapeDtypeStruct((b_pad, H), c0.dtype),
        ),
        grid=(b_pad // bm, T),
        in_specs=[x_spec, state_spec, state_spec, w_spec, wco_spec, b_spec],
        out_specs=(state_spec, state_spec),
        scratch_shapes=[
            pltpu.VMEM((bm, H), jnp.float32),  # h carry (f32 across steps)
            pltpu.VMEM((bm, H), jnp.float32),  # c carry (f32 across steps)
        ],
        input_output_aliases={1: 0, 2: 1},
        compiler_params=pltpu.CompilerParams(
            dimension_semantics=("parallel", "arbitrary"),
        ),
    )(xs, h0, c0, w_all, w_co, b_gates)
    return h_t[:B], c_t[:B]


# ---------------------------------------------------------------------------
# Parameter packing + pure-JAX reference
# ---------------------------------------------------------------------------


def pack_lstm_params(Ws, bs, *, weight_dtype=jnp.bfloat16):
    """Pack the 11 nn.Linear (out,in) weights / biases into the fused layout.

    Returns:
      w_all   : (3H, 4H) rows [x;h;c], cols [i|f|c~|o]; c->c~ / c->o are zero.
      w_co    : (H, H)   o-peephole on c_new.
      b_gates : (1, 4H)  pre-summed per-gate biases (f32).
    """
    t = lambda k: Ws[k].T.astype(jnp.float32)  # torch Linear: y = x @ W.T + b
    H = Ws["xi"].shape[0]
    zeros = jnp.zeros((H, H), jnp.float32)
    w_x = jnp.concatenate([t("xi"), t("xf"), t("xc"), t("xo")], axis=1)
    w_h = jnp.concatenate([t("hi"), t("hf"), t("hc"), t("ho")], axis=1)
    w_c = jnp.concatenate([t("ci"), t("cf"), zeros, zeros], axis=1)
    w_all = jnp.concatenate([w_x, w_h, w_c], axis=0).astype(weight_dtype)
    w_co = t("co").astype(weight_dtype)
    b_i = bs["xi"] + bs["hi"] + bs["ci"]
    b_f = bs["xf"] + bs["hf"] + bs["cf"]
    b_c = bs["xc"] + bs["hc"]
    b_o = bs["xo"] + bs["ho"] + bs["co"]  # wco bias folded into the o gate
    b_gates = jnp.concatenate([b_i, b_f, b_c, b_o])[None, :].astype(jnp.float32)
    return w_all, w_co, b_gates


def _reference_step(x, h, c, Ws, bs):
    """Pure-JAX reference mirroring the PyTorch forward (unpacked weights)."""
    lin = lambda a, k: a @ Ws[k].T + bs[k]
    i = jax.nn.sigmoid(lin(x, "xi") + lin(h, "hi") + lin(c, "ci"))
    f = jax.nn.sigmoid(lin(x, "xf") + lin(h, "hf") + lin(c, "cf"))
    c_new = f * c + i * jnp.tanh(lin(x, "xc") + lin(h, "hc"))
    o = jax.nn.sigmoid(lin(x, "xo") + lin(h, "ho") + lin(c_new, "co"))
    h_new = o * jnp.tanh(c_new)
    return h_new, c_new


# ---------------------------------------------------------------------------
# Demo / correctness check
# ---------------------------------------------------------------------------


if __name__ == "__main__":
    B, H, T = 64, 128, 4  # hidden on lanes (128-aligned), batch on sublanes/grid

    key = jax.random.PRNGKey(0)
    keys = jax.random.split(key, 4 + 22)

    x = jax.random.normal(keys[0], (B, H), dtype=jnp.float32)
    h = jax.random.normal(keys[1], (B, H), dtype=jnp.float32)
    c = jax.random.normal(keys[2], (B, H), dtype=jnp.float32)
    xs = jax.random.normal(keys[3], (T, B, H), dtype=jnp.float32)

    # nn.Linear(H, H) default init: U(-1/sqrt(H), 1/sqrt(H)), torch (out, in).
    names = ["xi", "hi", "ci", "xf", "hf", "cf", "xc", "hc", "xo", "ho", "co"]
    bound = 1.0 / math.sqrt(H)
    Ws, bs = {}, {}
    for idx, name in enumerate(names):
        kw = keys[4 + idx]
        kb = keys[4 + 11 + idx]
        Ws[name] = jax.random.uniform(kw, (H, H), jnp.float32, -bound, bound)
        bs[name] = jax.random.uniform(kb, (H,), jnp.float32, -bound, bound)

    # ---- f32 weights: exact-semantics single step --------------------------
    w32, wco32, b32 = pack_lstm_params(Ws, bs, weight_dtype=jnp.float32)
    h_out, c_out = lstm_cell(x, h, c, w32, wco32, b32)
    jax.block_until_ready((h_out, c_out))

    h_ref, c_ref = _reference_step(x, h, c, Ws, bs)
    assert jnp.allclose(h_out, h_ref, atol=1e-5, rtol=1e-5), (
        "h mismatch, max err %e" % float(jnp.max(jnp.abs(h_out - h_ref))))
    assert jnp.allclose(c_out, c_ref, atol=1e-5, rtol=1e-5), (
        "c mismatch, max err %e" % float(jnp.max(jnp.abs(c_out - c_ref))))

    # ---- f32 weights: fused T-step sequence (weights stay VMEM-resident) ---
    h_seq, c_seq = lstm_sequence(xs, h, c, w32, wco32, b32)
    jax.block_until_ready((h_seq, c_seq))
    h_r, c_r = h, c
    for t_idx in range(T):
        h_r, c_r = _reference_step(xs[t_idx], h_r, c_r, Ws, bs)
    assert jnp.allclose(h_seq, h_r, atol=1e-4, rtol=1e-4), (
        "seq h mismatch, max err %e" % float(jnp.max(jnp.abs(h_seq - h_r))))
    assert jnp.allclose(c_seq, c_r, atol=1e-4, rtol=1e-4), (
        "seq c mismatch, max err %e" % float(jnp.max(jnp.abs(c_seq - c_r))))

    # ---- bf16 weights/activations (perf path), f32 accumulation ------------
    wbf, wcobf, bbf = pack_lstm_params(Ws, bs)  # default bf16
    hb, cb = lstm_cell(x.astype(jnp.bfloat16), h.astype(jnp.bfloat16),
                       c.astype(jnp.bfloat16), wbf, wcobf, bbf)
    jax.block_until_ready((hb, cb))
    # Reference with the same bf16-quantized weights/inputs (upcast to f32).
    Ws_q = {k: v.astype(jnp.bfloat16).astype(jnp.float32) for k, v in Ws.items()}
    xq = x.astype(jnp.bfloat16).astype(jnp.float32)
    hq = h.astype(jnp.bfloat16).astype(jnp.float32)
    cq = c.astype(jnp.bfloat16).astype(jnp.float32)
    h_ref_q, c_ref_q = _reference_step(xq, hq, cq, Ws_q, bs)
    assert jnp.allclose(hb.astype(jnp.float32), h_ref_q, atol=5e-2), (
        "bf16 h mismatch, max err %e"
        % float(jnp.max(jnp.abs(hb.astype(jnp.float32) - h_ref_q))))
    assert jnp.allclose(cb.astype(jnp.float32), c_ref_q, atol=5e-2), (
        "bf16 c mismatch, max err %e"
        % float(jnp.max(jnp.abs(cb.astype(jnp.float32) - c_ref_q))))

    print("KERNEL_OK")
</pallas_src>

<mosaic_0001>
module attributes {stable_mosaic.version = 11 : i64} {
  func.func @_lstm_cell_kernel(%arg0: i32, %arg1: memref<32x128xf32, #tpu.memory_space<vmem>>, %arg2: memref<32x128xf32, #tpu.memory_space<vmem>>, %arg3: memref<32x128xf32, #tpu.memory_space<vmem>>, %arg4: memref<384x512xf32, #tpu.memory_space<vmem>>, %arg5: memref<128x128xf32, #tpu.memory_space<vmem>>, %arg6: memref<1x512xf32, #tpu.memory_space<vmem>>, %arg7: memref<32x128xf32, #tpu.memory_space<vmem>>, %arg8: memref<32x128xf32, #tpu.memory_space<vmem>>) attributes {dimension_semantics = [#tpu.dimension_semantics<parallel>], iteration_bounds = array<i64: 2>, scalar_prefetch = 0 : i64, scratch_operands = 0 : i64, tpu.core_type = #tpu.core_type<tc>, window_params = [{transform_indices = @transform_0, window_bounds = array<i64: 32, 128>}, {transform_indices = @transform_1, window_bounds = array<i64: 32, 128>}, {transform_indices = @transform_2, window_bounds = array<i64: 32, 128>}, {pipeline_mode = #tpu.pipeline_mode<synchronous>, transform_indices = @transform_3, window_bounds = array<i64: 384, 512>}, {pipeline_mode = #tpu.pipeline_mode<synchronous>, transform_indices = @transform_4, window_bounds = array<i64: 128, 128>}, {pipeline_mode = #tpu.pipeline_mode<synchronous>, transform_indices = @transform_5, window_bounds = array<i64: 1, 512>}, {transform_indices = @transform_6, window_bounds = array<i64: 32, 128>}, {transform_indices = @transform_7, window_bounds = array<i64: 32, 128>}]} {
    %c0 = arith.constant 0 : index
    %c0_0 = arith.constant 0 : index
    %0 = vector.load %arg1[%c0, %c0_0] : memref<32x128xf32, #tpu.memory_space<vmem>>, vector<32x128xf32>
    %c0_1 = arith.constant 0 : index
    %c0_2 = arith.constant 0 : index
    %1 = vector.load %arg2[%c0_1, %c0_2] : memref<32x128xf32, #tpu.memory_space<vmem>>, vector<32x128xf32>
    %c0_3 = arith.constant 0 : index
    %c0_4 = arith.constant 0 : index
    %2 = vector.load %arg3[%c0_3, %c0_4] : memref<32x128xf32, #tpu.memory_space<vmem>>, vector<32x128xf32>
    %c0_5 = arith.constant 0 : index
    %c0_6 = arith.constant 0 : index
    %3 = vector.load %arg4[%c0_5, %c0_6] : memref<384x512xf32, #tpu.memory_space<vmem>>, vector<128x512xf32>
    %cst = arith.constant dense<0.000000e+00> : vector<32x512xf32>
    %4 = tpu.matmul %0, %3, %cst {dimension_numbers = #tpu.dot_dimension_numbers<[1], [0], [0], [1], [0, 0, 1, 1], [], []>} : vector<32x128xf32>, vector<128x512xf32>, vector<32x512xf32> -> vector<32x512xf32>
    %c128 = arith.constant 128 : index
    %c0_7 = arith.constant 0 : index
    %5 = vector.load %arg4[%c128, %c0_7] : memref<384x512xf32, #tpu.memory_space<vmem>>, vector<128x512xf32>
    %cst_8 = arith.constant dense<0.000000e+00> : vector<32x512xf32>
    %6 = tpu.matmul %1, %5, %cst_8 {dimension_numbers = #tpu.dot_dimension_numbers<[1], [0], [0], [1], [0, 0, 1, 1], [], []>} : vector<32x128xf32>, vector<128x512xf32>, vector<32x512xf32> -> vector<32x512xf32>
    %7 = arith.addf %4, %6 : vector<32x512xf32>
    %c256 = arith.constant 256 : index
    %c0_9 = arith.constant 0 : index
    %8 = vector.load %arg4[%c256, %c0_9] : memref<384x512xf32, #tpu.memory_space<vmem>>, vector<128x512xf32>
    %cst_10 = arith.constant dense<0.000000e+00> : vector<32x512xf32>
    %9 = tpu.matmul %2, %8, %cst_10 {dimension_numbers = #tpu.dot_dimension_numbers<[1], [0], [0], [1], [0, 0, 1, 1], [], []>} : vector<32x128xf32>, vector<128x512xf32>, vector<32x512xf32> -> vector<32x512xf32>
    %10 = arith.addf %7, %9 : vector<32x512xf32>
    %c0_11 = arith.constant 0 : index
    %c0_12 = arith.constant 0 : index
    %11 = vector.load %arg6[%c0_11, %c0_12] : memref<1x512xf32, #tpu.memory_space<vmem>>, vector<1x512xf32>
    %12 = vector.broadcast %11 : vector<1x512xf32> to vector<32x512xf32>
    %13 = arith.addf %10, %12 : vector<32x512xf32>
    %14 = vector.extract_strided_slice %13 {offsets = [0, 0], sizes = [32, 128], strides = [1, 1]} : vector<32x512xf32> to vector<32x128xf32>
    %15 = arith.negf %14 : vector<32x128xf32>
    %16 = math.exp %15 : vector<32x128xf32>
    %cst_13 = arith.constant 1.000000e+00 : f32
    %17 = vector.broadcast %cst_13 : f32 to vector<32x128xf32>
    %18 = arith.addf %17, %16 : vector<32x128xf32>
    %19 = arith.divf %17, %18 : vector<32x128xf32>
    %20 = vector.extract_strided_slice %13 {offsets = [0, 128], sizes = [32, 128], strides = [1, 1]} : vector<32x512xf32> to vector<32x128xf32>
    %21 = arith.negf %20 : vector<32x128xf32>
    %22 = math.exp %21 : vector<32x128xf32>
    %cst_14 = arith.constant 1.000000e+00 : f32
    %23 = vector.broadcast %cst_14 : f32 to vector<32x128xf32>
    %24 = arith.addf %23, %22 : vector<32x128xf32>
    %25 = arith.divf %23, %24 : vector<32x128xf32>
    %26 = arith.mulf %25, %2 : vector<32x128xf32>
    %27 = vector.extract_strided_slice %13 {offsets = [0, 256], sizes = [32, 128], strides = [1, 1]} : vector<32x512xf32> to vector<32x128xf32>
    %28 = math.tanh %27 : vector<32x128xf32>
    %29 = arith.mulf %19, %28 : vector<32x128xf32>
    %30 = arith.addf %26, %29 : vector<32x128xf32>
    %31 = vector.extract_strided_slice %13 {offsets = [0, 384], sizes = [32, 128], strides = [1, 1]} : vector<32x512xf32> to vector<32x128xf32>
    %c0_15 = arith.constant 0 : index
    %c0_16 = arith.constant 0 : index
    %32 = vector.load %arg5[%c0_15, %c0_16] : memref<128x128xf32, #tpu.memory_space<vmem>>, vector<128x128xf32>
    %cst_17 = arith.constant dense<0.000000e+00> : vector<32x128xf32>
    %33 = tpu.matmul %30, %32, %cst_17 {dimension_numbers = #tpu.dot_dimension_numbers<[1], [0], [0], [1], [0, 0, 1, 1], [], []>} : vector<32x128xf32>, vector<128x128xf32>, vector<32x128xf32> -> vector<32x128xf32>
    %34 = arith.addf %31, %33 : vector<32x128xf32>
    %35 = arith.negf %34 : vector<32x128xf32>
    %36 = math.exp %35 : vector<32x128xf32>
    %cst_18 = arith.constant 1.000000e+00 : f32
    %37 = vector.broadcast %cst_18 : f32 to vector<32x128xf32>
    %38 = arith.addf %37, %36 : vector<32x128xf32>
    %39 = arith.divf %37, %38 : vector<32x128xf32>
    %40 = math.tanh %30 : vector<32x128xf32>
    %41 = arith.mulf %39, %40 : vector<32x128xf32>
    %c0_19 = arith.constant 0 : index
    %c0_20 = arith.constant 0 : index
    %42 = vector.load %arg7[%c0_19, %c0_20] : memref<32x128xf32, #tpu.memory_space<vmem>>, vector<32x128xf32>
    tpu.vector_store %arg7[%c0_19, %c0_20], %41 {strides = array<i32>} : memref<32x128xf32, #tpu.memory_space<vmem>>, vector<32x128xf32>,
    %c0_21 = arith.constant 0 : index
    %c0_22 = arith.constant 0 : index
    %43 = vector.load %arg8[%c0_21, %c0_22] : memref<32x128xf32, #tpu.memory_space<vmem>>, vector<32x128xf32>
    tpu.vector_store %arg8[%c0_21, %c0_22], %30 {strides = array<i32>} : memref<32x128xf32, #tpu.memory_space<vmem>>, vector<32x128xf32>,
    return
  }
  func.func @transform_0(%arg0: i32) -> (i32, i32) {
    %c0_i32 = arith.constant 0 : i32
    %c0_i32_0 = arith.constant 0 : i32
    return %arg0, %c0_i32 : i32, i32
  }
  func.func @transform_1(%arg0: i32) -> (i32, i32) {
    %c0_i32 = arith.constant 0 : i32
    %c0_i32_0 = arith.constant 0 : i32
    return %arg0, %c0_i32 : i32, i32
  }
  func.func @transform_2(%arg0: i32) -> (i32, i32) {
    %c0_i32 = arith.constant 0 : i32
    %c0_i32_0 = arith.constant 0 : i32
    return %arg0, %c0_i32 : i32, i32
  }
  func.func @transform_3(%arg0: i32) -> (i32, i32) {
    %c0_i32 = arith.constant 0 : i32
    %c0_i32_0 = arith.constant 0 : i32
    %c0_i32_1 = arith.constant 0 : i32
    return %c0_i32, %c0_i32_0 : i32, i32
  }
  func.func @transform_4(%arg0: i32) -> (i32, i32) {
    %c0_i32 = arith.constant 0 : i32
    %c0_i32_0 = arith.constant 0 : i32
    %c0_i32_1 = arith.constant 0 : i32
    return %c0_i32, %c0_i32_0 : i32, i32
  }
  func.func @transform_5(%arg0: i32) -> (i32, i32) {
    %c0_i32 = arith.constant 0 : i32
    %c0_i32_0 = arith.constant 0 : i32
    %c0_i32_1 = arith.constant 0 : i32
    return %c0_i32, %c0_i32_0 : i32, i32
  }
  func.func @transform_6(%arg0: i32) -> (i32, i32) {
    %c0_i32 = arith.constant 0 : i32
    %c0_i32_0 = arith.constant 0 : i32
    return %arg0, %c0_i32 : i32, i32
  }
  func.func @transform_7(%arg0: i32) -> (i32, i32) {
    %c0_i32 = arith.constant 0 : i32
    %c0_i32_0 = arith.constant 0 : i32
    return %arg0, %c0_i32 : i32, i32
  }
}

</mosaic_0001>

<bundles_post_ra>
// kernel: lstm_cell.1
= control target key start
LH: loop header
LB: loop body
LE: loop exit
PB: predicated region body
PF: predicated region fallthrough
CT: control target
= control target key end

     0   :  { %s2911_s0 = inlined_call_operand.vmem [shape: f32[64,128], index: 0, kind: input, shape index: {}]   ;;  %s2912_s1 = inlined_call_operand.hbm [shape: f32[64,128], index: 1, kind: input, shape index: {}, may-alias: {1,6}]   ;;  %s2913_s2 = inlined_call_operand.hbm [shape: f32[64,128], index: 2, kind: input, shape index: {}, may-alias: {2,7}]   ;;  %s2914_s3 = inlined_call_operand.hbm [shape: f32[384,512], index: 3, kind: input, shape index: {}]   ;;  %s2915_s4 = inlined_call_operand.vmem [shape: f32[128,128], index: 4, kind: input, shape index: {}]   ;;  %s2916_s5 = inlined_call_operand.hbm [shape: f32[1,512], index: 5, kind: input, shape index: {}]   ;;  %s2917_s6 = inlined_call_operand.hbm [shape: f32[64,128], index: 6, kind: output, shape index: {0}, may-alias: {1,6}]   ;;  %s2918_s7 = inlined_call_operand.hbm [shape: f32[64,128], index: 7, kind: output, shape index: {1}, may-alias: {2,7}]  }
   0x1   :  { %2923 = sst [smem:[#allocation20_spill]] %s2912_s1 }
   0x2   :  { %2924 = sst [smem:[#allocation21_spill]] %s2914_s3 }
   0x3   :  { %2925 = sst [smem:[#allocation22_spill]] %s2916_s5 }
   0x4   :  { %13 = vsyncpa [#allocation3], 0 }
   0x5   :  { %15 = vsyncpa [#allocation3 + $0x1], 0 }
   0x6   :  { %16 = vsyncpa [#allocation6], 0 }
   0x7   :  { %18 = vsyncpa [#allocation6 + $0x1], 0 }
   0x8   :  { %19 = vsyncpa [#allocation9], 0 }
   0x9   :  { %20 = vsyncpa [#allocation4], 0 }
   0xa   :  { %22 = vsyncpa [#allocation4 + $0x1], 0 }
   0xb   :  { %23 = vsyncpa [#allocation12], 0 }
   0xc   :  { %25 = vsyncpa [#allocation12 + $0x1], 0  ;;  %s2399_s24 = smov 0   ;;  %s2401_s25 = smov 0  }
   0xd   :  { %s2403_s26 = smov 0   ;;  %s2405_s27 = smov 0  }
   0xe LB: > { %s2420_s28 = sadd.s32 4294967295, %s2344_s27   ;;  %s1596_s29 = sadd.s32 4294967294, %s2344_s27   ;;  %s2344_s27 = sphi %s2405_s27, %s2951_s27   ;;  %s2340_s26 = sphi %s2403_s26, %s2950_s26   ;;  %s2336_s25 = sphi %s2401_s25, %s2949_s25   ;;  %s2332_s24 = sphi %s2399_s24, %s2948_s24  }
   0xf   : > { %p77_p0 = scmp.ne.s32.totalorder %s2336_s25, %s2332_s24  ;;  %p2919_p1 = scmp.eq.s32.totalorder %s2420_s28, 0 }
  0x10   : > { %p196_p3 = scmp.eq.s32.totalorder %s1596_s29, 1  ;;  %p1597_p5 = scmp.ge.s32.totalorder %s2344_s27, 1 }
  0x11   : > { %p2429_p4 = por %p2919_p1, %p77_p0  ;;  %p229_p7 = scmp.lt.s32.totalorder %s2344_s27, 3 }
  0x12   : > { %p2434_p6 = por %p196_p3, %p77_p0  ;;  %s2346_s10 = smov [#allocation7]  }
  0x13   : > { %s2926_s30 = scalar_select %p2429_p4, 1, 0 }
  0x14   : > { %s2927_s8 = scalar_select %p2434_p6, 1, 0 }
  0x15   : > { %p2439_p8 = pnand %p1597_p5, %p229_p7  ;;  %s241_s11 = sshll.u32 %s2346_s10, 4  ;;  %s2443_s11 = int_to_ptr.vmem [resolvable:$true] %s241_s11 }
  0x16   : > { %s2347_s13 = smov [#allocation8]   ;;  %s2930_s3 = sld [smem:[#allocation21_spill]] }
  0x17   : > { %p1986_p9 = pneg %p2439_p8  ;;  %s258_s14 = sshll.u32 %s2347_s13, 4  ;;  %s2454_s14 = int_to_ptr.vmem [resolvable:$true] %s258_s14 }
  0x19   : > { %p2450_p11 = pnand %p1986_p9, %p2919_p1 }
  0x1b   : > { %p2120_p13 = pneg %p2450_p11 }
  0x1c   : > { %s2118_s17 = scalar_lea.hbm %s2930_s3, 24576 }
  0x1d   : > { %p2119_p12 = scmp.ne.s32.totalorder %s2930_s3, %s2118_s17  ;;  %p2125_p5 = scmp.lt.u32.totalorder %s2118_s17, %s2930_s3 }
  0x1f   : > { %p2121_p0 = pnand %p2120_p13, %p2119_p12 }
  0x21   : > { %p2122_p3 = pneg %p2121_p0 }
  0x23   : > { %p2127_p7 = pnand %p2125_p5, %p2122_p3 }
  0x25   : > { %2130 = shalt.err (!%p2127_p7)
}
  0x26   : > { %s2131_s22 = scalar_lea.vmem %s2443_s11, 24576  ;;  %p2139_p2 = scmp.lt.s32.totalorder %s2443_s11, %s2443_s11 }
  0x27   : > { %p2132_p9 = scmp.ne.s32.totalorder %s2443_s11, %s2131_s22  ;;  %p2140_p12 = scmp.lt.s32.totalorder %s2131_s22, %s2131_s22 }
  0x29   : > { %p2134_p10 = pnand %p2132_p9, %p2120_p13  ;;  %p2141_p0 = por %p2140_p12, %p2139_p2 }
  0x2b   : > { %p2135_p1 = pneg %p2134_p10 }
  0x2d   : > { %p2142_p6 = pnand %p2141_p0, %p2135_p1 }
  0x2f   : > { %2145 = shalt.err (!%p2142_p6)
}
  0x30   : > { %s2348_s23 = smov 512   ;;  %s2349_s29 = smov 32  }
  0x31   : > { %1989 = dma.hbm_to_vmem [thread:$0]  (!%p2450_p11), %s2930_s3, 24576, %s2443_s11, [#allocation6], %s2348_s23, %s2348_s23, %s2349_s29  }
  0x32   : > { %s2931_s5 = sld [smem:[#allocation22_spill]] }
  0x38   : > { %s2146_s17 = scalar_lea.hbm %s2931_s5, 64 }
  0x39   : > { %p2147_p2 = scmp.ne.s32.totalorder %s2931_s5, %s2146_s17  ;;  %p2153_p10 = scmp.lt.u32.totalorder %s2146_s17, %s2931_s5 }
  0x3b   : > { %p2149_p1 = pnand %p2147_p2, %p2120_p13 }
  0x3d   : > { %p2150_p6 = pneg %p2149_p1 }
  0x3f   : > { %p2155_p3 = pnand %p2153_p10, %p2150_p6 }
  0x41   : > { %2158 = shalt.err (!%p2155_p3)
}
  0x42   : > { %s2159_s11 = scalar_lea.vmem %s2454_s14, 64  ;;  %p2167_p12 = scmp.lt.s32.totalorder %s2454_s14, %s2454_s14 }
  0x43   : > { %p2160_p5 = scmp.ne.s32.totalorder %s2454_s14, %s2159_s11  ;;  %p2168_p0 = scmp.lt.s32.totalorder %s2159_s11, %s2159_s11 }
  0x45   : > { %p2162_p7 = pnand %p2160_p5, %p2120_p13  ;;  %p2169_p2 = por %p2168_p0, %p2167_p12 }
  0x47   : > { %p2163_p9 = pneg %p2162_p7 }
  0x49   : > { %p2170_p1 = pnand %p2169_p2, %p2163_p9 }
  0x4b   : > { %2173 = shalt.err (!%p2170_p1)
}
  0x4c   : > { %1992 = dma.hbm_to_vmem [thread:$0]  (!%p2450_p11), %s2931_s5, 64, %s2454_s14, [#allocation9]  }
  0x4d   : > { %s2509_s29 = sadd.s32 1, %s2344_s27   ;;  %s64_s12 = sadd.s32 1, %s2340_s26 }
  0x4e   : > { %s61_s10 = ssub.s32 %s2344_s27, %s2509_s29  ;;  %p71_p13 = scmp.ne.s32.totalorder %s2340_s26, %s2336_s25 }
  0x4f   : > { %p62_p6 = scmp.eq.s32.totalorder %s61_s10, 0  ;;  %p72_p10 = scmp.eq.s32.totalorder %s2344_s27, 0 }
  0x50   : > { %p2932_p3 = scmp.eq.s32.totalorder %s2420_s28, 1  ;;  %p2009_p7 = scmp.lt.s32.totalorder %s2344_s27, 2 }
  0x51   : > { %s2525_s15 = scalar_select %p62_p6, %s2340_s26, %s64_s12  }
  0x52   : > { %p2519_p5 = por %p2932_p3, %p71_p13  ;;  %p73_p9 = por %p72_p10, %p71_p13 }
  0x53   : > { %2934 = sst [smem:[#allocation19_spill]] %s2525_s15  ;;  %s278_s16 = sand.u32 1, %s2340_s26  }
  0x54   : > { %s2933_s13 = scalar_select %p2519_p5, 1, 0 }
  0x55   : > { %s2528_s17 = sshll.u32 %s278_s16, 5  ;;  %s2920_s14 = sshll.u32 %s2344_s27, 9 }
  0x56   : > { %s2935_s1 = sld [smem:[#allocation20_spill]]  ;;  %s282_s21 = scalar_lea.vmem [#allocation2], %s2528_s17 }
  0x57   : > { %s289_s11 = sshll.u32 %s282_s21, 4  ;;  %p2541_p11 = pnand %p2009_p7, %p73_p9  ;;  %s2539_s11 = int_to_ptr.vmem [resolvable:$true] %s289_s11 }
  0x58   : > { %s2545_s23 = scalar_lea.sflag [#allocation3], %s278_s16 }
  0x59   : > { %p2176_p0 = pneg %p2541_p11 }
  0x5c   : > { %s2536_s20 = scalar_lea.hbm %s2935_s1, %s2920_s14  ;;  %s2179_s19 = scalar_lea.hbm %s2935_s1, 1024 }
  0x5d   : > { %s2174_s12 = scalar_lea.hbm %s2536_s20, 512  ;;  %p2180_p13 = scmp.lt.u32.totalorder %s2536_s20, %s2935_s1 }
  0x5e   : > { %p2175_p12 = scmp.ne.s32.totalorder %s2536_s20, %s2174_s12  ;;  %p2181_p6 = scmp.lt.u32.totalorder %s2179_s19, %s2174_s12 }
  0x5f   : > { %p2183_p3 = scmp.lt.u32.totalorder %s2174_s12, %s2536_s20 }
  0x60   : > { %p2177_p2 = pnand %p2176_p0, %p2175_p12  ;;  %p2182_p10 = por %p2181_p6, %p2180_p13 }
  0x62   : > { %p2178_p1 = pneg %p2177_p2  ;;  %p2184_p7 = por %p2183_p3, %p2182_p10 }
  0x64   : > { %p2185_p9 = pnand %p2184_p7, %p2178_p1 }
  0x66   : > { %2188 = shalt.err (!%p2185_p9)
}
  0x67   : > { %s2189_s16 = scalar_lea.vmem %s2539_s11, 512  ;;  %s2350_s10 = smov [#allocation2]  }
  0x68   : > { %p2190_p12 = scmp.ne.s32.totalorder %s2539_s11, %s2189_s16  ;;  %s2194_s18 = sshll.u32 %s2350_s10, 4  ;;  %s2195_s18 = int_to_ptr.vmem [resolvable:$false] %s2194_s18 }
  0x69   : > { %s2196_s14 = scalar_lea.vmem %s2195_s18, 1024  ;;  %p2197_p4 = scmp.lt.s32.totalorder %s2539_s11, %s2195_s18 }
  0x6a   : > { %p2192_p2 = pnand %p2190_p12, %p2176_p0  ;;  %p2198_p13 = scmp.lt.s32.totalorder %s2196_s14, %s2189_s16 }
  0x6c   : > { %p2193_p5 = pneg %p2192_p2  ;;  %p2199_p6 = por %p2198_p13, %p2197_p4 }
  0x6e   : > { %p2200_p10 = pnand %p2199_p6, %p2193_p5 }
  0x70   : > { %2203 = shalt.err (!%p2200_p10)
}
  0x71   : > { %s2351_s12 = smov 128   ;;  %s2352_s19 = smov 8  }
  0x72   : > { %1996 = dma.hbm_to_vmem [thread:$0]  (!%p2541_p11), %s2536_s20, 512, %s2539_s11, %s2545_s23, %s2351_s12, %s2351_s12, %s2352_s19  }
  0x73   : > { %s2937_s21 = sshll.u32 %s2344_s27, 9  ;;  %s303_s14 = scalar_lea.vmem [#allocation5], %s2528_s17 }
  0x74   : > { %s2581_s18 = scalar_lea.hbm %s2913_s2, %s2937_s21  ;;  %s310_s1 = sshll.u32 %s303_s14, 4  ;;  %s2584_s1 = int_to_ptr.vmem [resolvable:$true] %s310_s1 }
  0x75   : > { %s299_s3 = sand.u32 1, %s2344_s27   ;;  %s2204_s15 = scalar_lea.hbm %s2581_s18, 512 }
  0x76   : > { %s2587_s5 = scalar_lea.sflag [#allocation6], %s299_s3  ;;  %p2205_p4 = scmp.ne.s32.totalorder %s2581_s18, %s2204_s15 }
  0x77   : > { %s2209_s23 = scalar_lea.hbm %s2913_s2, 1024  ;;  %p2210_p3 = scmp.lt.u32.totalorder %s2581_s18, %s2913_s2 }
  0x78   : > { %p2207_p5 = pnand %p2205_p4, %p2176_p0  ;;  %p2211_p7 = scmp.lt.u32.totalorder %s2209_s23, %s2204_s15 }
  0x79   : > { %p2213_p12 = scmp.lt.u32.totalorder %s2204_s15, %s2581_s18 }
  0x7a   : > { %p2208_p1 = pneg %p2207_p5  ;;  %p2212_p9 = por %p2211_p7, %p2210_p3 }
  0x7c   : > { %p2214_p2 = por %p2213_p12, %p2212_p9 }
  0x7e   : > { %p2215_p13 = pnand %p2214_p2, %p2208_p1 }
  0x80   : > { %2218 = shalt.err (!%p2215_p13)
}
  0x81   : > { %s2219_s3 = scalar_lea.vmem %s2584_s1, 512  ;;  %s2353_s17 = smov [#allocation5]  }
  0x82   : > { %p2220_p6 = scmp.ne.s32.totalorder %s2584_s1, %s2219_s3  ;;  %s2224_s10 = sshll.u32 %s2353_s17, 4  ;;  %s2225_s10 = int_to_ptr.vmem [resolvable:$false] %s2224_s10 }
  0x83   : > { %s2226_s14 = scalar_lea.vmem %s2225_s10, 1024  ;;  %p2227_p5 = scmp.lt.s32.totalorder %s2584_s1, %s2225_s10 }
  0x84   : > { %p2222_p10 = pnand %p2220_p6, %p2176_p0  ;;  %p2228_p3 = scmp.lt.s32.totalorder %s2226_s14, %s2219_s3 }
  0x86   : > { %p2223_p4 = pneg %p2222_p10  ;;  %p2229_p7 = por %p2228_p3, %p2227_p5 }
  0x88   : > { %p2230_p9 = pnand %p2229_p7, %p2223_p4 }
  0x8a   : > { %2233 = shalt.err (!%p2230_p9)
}
  0x8b   : > { %1999 = dma.hbm_to_vmem [thread:$0]  (!%p2541_p11), %s2581_s18, 512, %s2584_s1, %s2587_s5, %s2351_s12, %s2351_s12, %s2352_s19  }
  0x8c   : > { %322 = sbr.rel (%p2439_p8) target bundleno = 773 (0x305), region = 44  ;;  %s2619_s15 = sand.u32 (!%p2439_p8), 1, %s2336_s25  }
  0x8d   : > { %s2622_s20 = sshll.u32 (!%p2439_p8), %s2619_s15, 5  ;;  %s325_s22 = scalar_lea.sflag (!%p2439_p8), [#allocation3], %s2619_s15 }
  0x8e   : > { %s2626_s11 = scalar_lea.vmem (!%p2439_p8), [#allocation2], %s2622_s20  ;;  %p2938_p0 = scmp.ne.s32.totalorder (!%p2439_p8), %s2926_s30, 0 }
  0x93   : > { %2307 = dma.done.wait (%p2938_p0), %s325_s22, 512  }
  0x94   : > { %2309 = vsyncadd (%p2938_p0), %s325_s22, 4294966784  ;;  %s333_s1 = sand.u32 1, %s2420_s28   ;;  %s2634_s9 = scalar_lea.vmem [#allocation5], %s2622_s20 }
  0x95   : > { %s334_s5 = scalar_lea.sflag [#allocation6], %s333_s1 }
  0x96   : > { %2311 = dma.done.wait (%p2938_p0), %s334_s5, 512  }
  0x97   : > { %2313 = vsyncadd (%p2938_p0), %s334_s5, 4294966784  ;;  %p2939_p8 = scmp.eq.s32.totalorder %s2420_s28, 0 }
  0x99   : > { %2315 = dma.done.wait (%p2939_p8), [#allocation6], 24576   ;;  %p2940_p11 = pmov %p2939_p8 }
  0x9a   : > { %p2941_p1 = pmov %p2939_p8 }
  0x9b   : > { %2317 = vsyncadd (%p2940_p11), [#allocation6], 4294942720 }
  0x9c   : > { %2319 = dma.done.wait (%p2941_p1), [#allocation9], 64   ;;  %p2942_p12 = pmov %p2941_p1 }
  0x9d   : > { %v2354_v0 = vmov 0.0   ;;  %v478_v1 = vld [vmem:[#allocation7 + $0x208] sm:$0xff]  ;;  %v480_v3 = vld [vmem:[#allocation7 + $0x218] sm:$0xff]  ;;  %v477_v6 = vld [vmem:[#allocation7 + $0x200] sm:$0xff]  ;;  %s1614_s30 = sshll.u32 %s2420_s28, 2  ;;  %s390_s16 = scalar_lea.vmem [#allocation11], %s2622_s20 }
  0x9e   : > { %2321 = vsyncadd (%p2942_p12), [#allocation9], 4294967232  ;;  %605 = vmatprep.mubr.f32.mxu0 %v2354_v0  ;;  %694 = vmatprep.mubr.f32.mxu1 %v2354_v0  ;;  %v482_v2 = vld [vmem:[#allocation7 + $0x228] sm:$0xff]  ;;  %v484_v5 = vld [vmem:[#allocation7 + $0x238] sm:$0xff]  ;;  %p2664_p2 = scmp.lt.s32.totalorder %s1614_s30, 7  ;;  %s1437_s3 = sshll.u32 %s390_s16, 4  ;;  %s2812_s3 = int_to_ptr.vmem [resolvable:$true] %s1437_s3 }
  0x9f   : > { %v1698_v4 = vpack.c.bf16 %v482_v2, %v478_v1  ;;  %v481_v7 = vld [vmem:[#allocation7 + $0x220] sm:$0xff]  ;;  %v1730_v8 = vpack.c.bf16 %v484_v5, %v480_v3  ;;  %v479_v10 = vld [vmem:[#allocation7 + $0x210] sm:$0xff]  ;;  %v486_v12 = vld [vmem:[#allocation7 + $0x248] sm:$0xff]  ;;  %s1638_s17 = sshll.u32 %s2420_s28, 9  ;;  %s2234_s1 = scalar_lea.vmem %s2812_s3, 512 }
  0xa0   : > { %v1700_v9 = vpack.c.bf16 %v481_v7, %v477_v6  ;;  %v483_v11 = vld [vmem:[#allocation7 + $0x230] sm:$0xff]  ;;  %v490_v14 = vld [vmem:[#allocation7 + $0x268] sm:$0xff]  ;;  %v488_v15 = vld [vmem:[#allocation7 + $0x258] sm:$0xff]  ;;  %s2953_s30 = smov (!%p2664_p2, %s1614_s30), 7  ;;  %s2819_s22 = scalar_lea.hbm %s2918_s7, %s1638_s17 }
  0xa1   : > { %1699 = vmatprep.subr.bf16.mxu0 %v1698_v4  ;;  %v1732_v13 = vpack.c.bf16 %v483_v11, %v479_v10  ;;  %v492_v16 = vld [vmem:[#allocation7 + $0x278] sm:$0xff]  ;;  %1731 = vmatprep.subr.bf16.mxu1 %v1730_v8  ;;  %v1702_v17 = vpack.c.bf16 %v490_v14, %v486_v12  ;;  %v485_v19 = vld [vmem:[#allocation7 + $0x240] sm:$0xff]  ;;  %v487_v21 = vld [vmem:[#allocation7 + $0x250] sm:$0xff]  ;;  %s1615_s19 = sshll.u32 %s2953_s30, 3  ;;  %p2235_p13 = scmp.ne.s32.totalorder %s2812_s3, %s2234_s1 }
  0xa2   : > { %1701 = vmatpush1.bf16.msra.mxu0 %v1700_v9  ;;  %v1734_v18 = vpack.c.bf16 %v492_v16, %v488_v15  ;;  %v489_v20 = vld [vmem:[#allocation7 + $0x260] sm:$0xff]  ;;  %v491_v23 = vld [vmem:[#allocation7 + $0x270] sm:$0xff]  ;;  %v494_v24 = vld [vmem:[#allocation7 + $0x288] sm:$0xff]  ;;  %s2676_s21 = scalar_lea.vmem %s2911_s0, %s1615_s19  ;;  %p2944_p6 = scmp.ne.s32.totalorder %s2933_s13, 0 }
  0xa3   : > { %1733 = vmatpush1.bf16.msra.mxu1 %v1732_v13  ;;  %v1704_v22 = vpack.c.bf16 %v489_v20, %v485_v19  ;;  %v498_v25 = vld [vmem:[#allocation7 + $0x2a8] sm:$0xff]  ;;  %1703 = vmatprep.subr.bf16.mxu0 %v1702_v17  ;;  %v1736_v26 = vpack.c.bf16 %v491_v23, %v487_v21  ;;  %v496_v28 = vld [vmem:[#allocation7 + $0x298] sm:$0xff]  ;;  %v493_v30 = vld [vmem:[#allocation7 + $0x280] sm:$0xff]  ;;  %s2355_s5 = smov [#allocation11]  }
  0xa4   : > { %1735 = vmatprep.subr.bf16.mxu1 %v1734_v18  ;;  %v1706_v27 = vpack.c.bf16 %v498_v25, %v494_v24  ;;  %v500_v29 = vld [vmem:[#allocation7 + $0x2b8] sm:$0xff]  ;;  %v497_v32 = vld [vmem:[#allocation7 + $0x2a0] sm:$0xff]  ;;  %v495_v33 = vld [vmem:[#allocation7 + $0x290] sm:$0xff]  ;;  %p2236_p10 = pnand %p2235_p13, %p2944_p6 }
  0xa5   : > { %v1738_v31 = vpack.c.bf16 %v500_v29, %v496_v28  ;;  %v499_v34 = vld [vmem:[#allocation7 + $0x2b0] sm:$0xff]  ;;  %v1708_v35 = vpack.c.bf16 %v497_v32, %v493_v30  ;;  %v502_v36 = vld [vmem:[#allocation7 + $0x2c8] sm:$0xff]  ;;  %v504_v38 = vld [vmem:[#allocation7 + $0x2d8] sm:$0xff] }
  0xa6   : > { %1705 = vmatpush1.bf16.msra.mxu0 %v1704_v22  ;;  %v506_v37 = vld [vmem:[#allocation7 + $0x2e8] sm:$0xff]  ;;  %v1740_v39 = vpack.c.bf16 %v499_v34, %v495_v33  ;;  %v508_v41 = vld [vmem:[#allocation7 + $0x2f8] sm:$0xff]  ;;  %v501_v42 = vld [vmem:[#allocation7 + $0x2c0] sm:$0xff]  ;;  %p2237_p4 = pneg %p2236_p10 }
  0xa7   : > { %1737 = vmatpush1.bf16.msra.mxu1 %v1736_v26  ;;  %1707 = vmatprep.subr.bf16.mxu0 %v1706_v27  ;;  %v1710_v40 = vpack.c.bf16 %v506_v37, %v502_v36  ;;  %v505_v43 = vld [vmem:[#allocation7 + $0x2e0] sm:$0xff]  ;;  %v1742_v44 = vpack.c.bf16 %v508_v41, %v504_v38  ;;  %v503_v45 = vld [vmem:[#allocation7 + $0x2d0] sm:$0xff]  ;;  %v510_v47 = vld [vmem:[#allocation7 + $0x308] sm:$0xff] }
  0xa8   : > { %1739 = vmatprep.subr.bf16.mxu1 %v1738_v31  ;;  %v507_v46 = vld [vmem:[#allocation7 + $0x2f0] sm:$0xff]  ;;  %v514_v48 = vld [vmem:[#allocation7 + $0x328] sm:$0xff]  ;;  %v512_v49 = vld [vmem:[#allocation7 + $0x318] sm:$0xff]  ;;  %v1712_v51 = vpack.c.bf16 %v505_v43, %v501_v42 }
  0xa9   : > { %v516_v50 = vld [vmem:[#allocation7 + $0x338] sm:$0xff]  ;;  %v1744_v52 = vpack.c.bf16 %v507_v46, %v503_v45  ;;  %v1714_v53 = vpack.c.bf16 %v514_v48, %v510_v47  ;;  %v509_v54 = vld [vmem:[#allocation7 + $0x300] sm:$0xff]  ;;  %v511_v56 = vld [vmem:[#allocation7 + $0x310] sm:$0xff] }
  0xaa   : > { %1709 = vmatpush1.bf16.msra.mxu0 %v1708_v35  ;;  %v513_v55 = vld [vmem:[#allocation7 + $0x320] sm:$0xff]  ;;  %v1746_v57 = vpack.c.bf16 %v516_v50, %v512_v49  ;;  %v515_v58 = vld [vmem:[#allocation7 + $0x330] sm:$0xff]  ;;  %v518_v59 = vld [vmem:[#allocation7 + $0x348] sm:$0xff] }
  0xab   : > { %1741 = vmatpush1.bf16.msra.mxu1 %v1740_v39  ;;  %1711 = vmatprep.subr.bf16.mxu0 %v1710_v40  ;;  %v522_v60 = vld [vmem:[#allocation7 + $0x368] sm:$0xff]  ;;  %v520_v61 = vld [vmem:[#allocation7 + $0x358] sm:$0xff]  ;;  %v1716_v63 = vpack.c.bf16 %v513_v55, %v509_v54  ;;  %v1748_v1 = vpack.c.bf16 %v515_v58, %v511_v56  ;;  %v517_v3 = vld [vmem:[#allocation7 + $0x340] sm:$0xff] }
  0xac   : > { %1743 = vmatprep.subr.bf16.mxu1 %v1742_v44  ;;  %v524_v62 = vld [vmem:[#allocation7 + $0x378] sm:$0xff]  ;;  %v1718_v2 = vpack.c.bf16 %v522_v60, %v518_v59  ;;  %v521_v4 = vld [vmem:[#allocation7 + $0x360] sm:$0xff]  ;;  %v519_v5 = vld [vmem:[#allocation7 + $0x350] sm:$0xff] }
  0xad   : > { %v1750_v6 = vpack.c.bf16 %v524_v62, %v520_v61  ;;  %v523_v7 = vld [vmem:[#allocation7 + $0x370] sm:$0xff]  ;;  %v526_v8 = vld [vmem:[#allocation7 + $0x388] sm:$0xff]  ;;  %v528_v10 = vld [vmem:[#allocation7 + $0x398] sm:$0xff]  ;;  %v1720_v12 = vpack.c.bf16 %v521_v4, %v517_v3 }
  0xae   : > { %1713 = vmatpush1.bf16.msra.mxu0 %v1712_v51  ;;  %v530_v9 = vld [vmem:[#allocation7 + $0x3a8] sm:$0xff]  ;;  %v532_v11 = vld [vmem:[#allocation7 + $0x3b8] sm:$0xff]  ;;  %v1752_v13 = vpack.c.bf16 %v523_v7, %v519_v5  ;;  %v525_v15 = vld [vmem:[#allocation7 + $0x380] sm:$0xff] }
  0xaf   : > { %1745 = vmatpush1.bf16.msra.mxu1 %v1744_v52  ;;  %1715 = vmatprep.subr.bf16.mxu0 %v1714_v53  ;;  %v1722_v14 = vpack.c.bf16 %v530_v9, %v526_v8  ;;  %v529_v16 = vld [vmem:[#allocation7 + $0x3a0] sm:$0xff]  ;;  %v527_v17 = vld [vmem:[#allocation7 + $0x390] sm:$0xff]  ;;  %v1754_v18 = vpack.c.bf16 %v532_v11, %v528_v10  ;;  %v534_v20 = vld [vmem:[#allocation7 + $0x3c8] sm:$0xff] }
  0xb0   : > { %1747 = vmatprep.subr.bf16.mxu1 %v1746_v57  ;;  %v531_v19 = vld [vmem:[#allocation7 + $0x3b0] sm:$0xff]  ;;  %v538_v21 = vld [vmem:[#allocation7 + $0x3e8] sm:$0xff]  ;;  %v536_v22 = vld [vmem:[#allocation7 + $0x3d8] sm:$0xff]  ;;  %v1724_v24 = vpack.c.bf16 %v529_v16, %v525_v15 }
  0xb1   : > { %v540_v23 = vld [vmem:[#allocation7 + $0x3f8] sm:$0xff]  ;;  %v1756_v25 = vpack.c.bf16 %v531_v19, %v527_v17  ;;  %v1726_v26 = vpack.c.bf16 %v538_v21, %v534_v20  ;;  %v533_v27 = vld [vmem:[#allocation7 + $0x3c0] sm:$0xff]  ;;  %v535_v29 = vld [vmem:[#allocation7 + $0x3d0] sm:$0xff] }
  0xb2   : > { %1717 = vmatpush1.bf16.msra.mxu0 %v1716_v63  ;;  %v537_v28 = vld [vmem:[#allocation7 + $0x3e0] sm:$0xff]  ;;  %v1758_v30 = vpack.c.bf16 %v540_v23, %v536_v22  ;;  %v539_v31 = vld [vmem:[#allocation7 + $0x3f0] sm:$0xff]  ;;  %v414_v32 = vld [vmem:[#allocation7 + $0x8] sm:$0xff] }
  0xb3   : > { %1749 = vmatpush1.bf16.msra.mxu1 %v1748_v1  ;;  %1719 = vmatprep.subr.bf16.mxu0 %v1718_v2  ;;  %v418_v33 = vld [vmem:[#allocation7 + $0x28] sm:$0xff]  ;;  %v416_v34 = vld [vmem:[#allocation7 + $0x18] sm:$0xff]  ;;  %v1728_v36 = vpack.c.bf16 %v537_v28, %v533_v27  ;;  %v1760_v37 = vpack.c.bf16 %v539_v31, %v535_v29  ;;  %v413_v39 = vld [vmem:[#allocation7] sm:$0xff] }
  0xb4   : > { %1751 = vmatprep.subr.bf16.mxu1 %v1750_v6  ;;  %v420_v35 = vld [vmem:[#allocation7 + $0x38] sm:$0xff]  ;;  %v1762_v38 = vpack.c.bf16 %v418_v33, %v414_v32  ;;  %v417_v40 = vld [vmem:[#allocation7 + $0x20] sm:$0xff]  ;;  %v415_v41 = vld [vmem:[#allocation7 + $0x10] sm:$0xff] }
  0xb5   : > { %v1794_v42 = vpack.c.bf16 %v420_v35, %v416_v34  ;;  %v419_v43 = vld [vmem:[#allocation7 + $0x30] sm:$0xff]  ;;  %v422_v44 = vld [vmem:[#allocation7 + $0x48] sm:$0xff]  ;;  %v424_v46 = vld [vmem:[#allocation7 + $0x58] sm:$0xff]  ;;  %v1764_v49 = vpack.c.bf16 %v417_v40, %v413_v39 }
  0xb6   : > { %1721 = vmatpush1.bf16.msra.mxu0 %v1720_v12  ;;  %v426_v45 = vld [vmem:[#allocation7 + $0x68] sm:$0xff]  ;;  %v428_v47 = vld [vmem:[#allocation7 + $0x78] sm:$0xff]  ;;  %v405_v48 = vld [vmem:[%s2626_s11] sm:$0xff]  ;;  %v1796_v50 = vpack.c.bf16 %v419_v43, %v415_v41 }
  0xb7   : > { %1753 = vmatpush1.bf16.msra.mxu1 %v1752_v13  ;;  %1723 = vmatprep.subr.bf16.mxu0 %v1722_v14  ;;  %v1766_v51 = vpack.c.bf16 %v426_v45, %v422_v44  ;;  %v421_v52 = vld [vmem:[#allocation7 + $0x40] sm:$0xff]  ;;  %v423_v54 = vld [vmem:[#allocation7 + $0x50] sm:$0xff]  ;;  %v1798_v55 = vpack.c.bf16 %v428_v47, %v424_v46  ;;  %v430_v57 = vld [vmem:[#allocation7 + $0x88] sm:$0xff] }
  0xb8   : > { %1755 = vmatprep.subr.bf16.mxu1 %v1754_v18  ;;  %v425_v53 = vld [vmem:[#allocation7 + $0x60] sm:$0xff]  ;;  %v427_v56 = vld [vmem:[#allocation7 + $0x70] sm:$0xff]  ;;  %v434_v58 = vld [vmem:[#allocation7 + $0xa8] sm:$0xff] }
  0xb9   : > { %v432_v59 = vld [vmem:[#allocation7 + $0x98] sm:$0xff]  ;;  %v1768_v61 = vpack.c.bf16 %v425_v53, %v421_v52  ;;  %v406_v62 = vld [vmem:[%s2626_s11 + $0x8] sm:$0xff]  ;;  %v1800_v63 = vpack.c.bf16 %v427_v56, %v423_v54  ;;  %v1770_v1 = vpack.c.bf16 %v434_v58, %v430_v57  ;;  %v429_v2 = vld [vmem:[#allocation7 + $0x80] sm:$0xff] }
  0xba   : > { %1725 = vmatpush1.bf16.msra.mxu0 %v1724_v24  ;;  %v436_v60 = vld [vmem:[#allocation7 + $0xb8] sm:$0xff]  ;;  %v433_v3 = vld [vmem:[#allocation7 + $0xa0] sm:$0xff]  ;;  %v431_v4 = vld [vmem:[#allocation7 + $0x90] sm:$0xff] }
  0xbb   : > { %1757 = vmatpush1.bf16.msra.mxu1 %v1756_v25  ;;  %1727 = vmatprep.subr.bf16.mxu0 %v1726_v26  ;;  %v1802_v5 = vpack.c.bf16 %v436_v60, %v432_v59  ;;  %v435_v6 = vld [vmem:[#allocation7 + $0xb0] sm:$0xff]  ;;  %v438_v7 = vld [vmem:[#allocation7 + $0xc8] sm:$0xff]  ;;  %v440_v9 = vld [vmem:[#allocation7 + $0xd8] sm:$0xff]  ;;  %v1772_v11 = vpack.c.bf16 %v433_v3, %v429_v2 }
  0xbc   : > { %1759 = vmatprep.subr.bf16.mxu1 %v1758_v30  ;;  %v442_v8 = vld [vmem:[#allocation7 + $0xe8] sm:$0xff]  ;;  %v444_v10 = vld [vmem:[#allocation7 + $0xf8] sm:$0xff]  ;;  %v407_v12 = vld [vmem:[%s2626_s11 + $0x10] sm:$0xff]  ;;  %v1804_v13 = vpack.c.bf16 %v435_v6, %v431_v4 }
  0xbd   : > { %v1774_v14 = vpack.c.bf16 %v442_v8, %v438_v7  ;;  %v437_v15 = vld [vmem:[#allocation7 + $0xc0] sm:$0xff]  ;;  %v439_v17 = vld [vmem:[#allocation7 + $0xd0] sm:$0xff]  ;;  %v1806_v18 = vpack.c.bf16 %v444_v10, %v440_v9  ;;  %v446_v20 = vld [vmem:[#allocation7 + $0x108] sm:$0xff] }
  0xbe   : > { %1729 = vmatpush1.bf16.msra.mxu0 %v1728_v36  ;;  %v441_v16 = vld [vmem:[#allocation7 + $0xe0] sm:$0xff]  ;;  %v443_v19 = vld [vmem:[#allocation7 + $0xf0] sm:$0xff]  ;;  %v450_v21 = vld [vmem:[#allocation7 + $0x128] sm:$0xff] }
  0xbf   : > { %1761 = vmatpush1.bf16.msra.mxu1 %v1760_v37  ;;  %1763 = vmatprep.subr.bf16.mxu0 %v1762_v38  ;;  %v448_v22 = vld [vmem:[#allocation7 + $0x118] sm:$0xff]  ;;  %v1776_v24 = vpack.c.bf16 %v441_v16, %v437_v15  ;;  %v1808_v26 = vpack.c.bf16 %v443_v19, %v439_v17  ;;  %v1778_v27 = vpack.c.bf16 %v450_v21, %v446_v20  ;;  %v445_v28 = vld [vmem:[#allocation7 + $0x100] sm:$0xff]  ;;  %v447_v30 = vld [vmem:[#allocation7 + $0x110] sm:$0xff] }
  0xc0   : > { %1795 = vmatprep.subr.bf16.mxu1 %v1794_v42  ;;  %v452_v23 = vld [vmem:[#allocation7 + $0x138] sm:$0xff]  ;;  %v449_v29 = vld [vmem:[#allocation7 + $0x120] sm:$0xff]  ;;  %v451_v32 = vld [vmem:[#allocation7 + $0x130] sm:$0xff] }
  0xc1   : > { %606 = vmatmul.mubr.f32.vlgmr.msra.gmra.mrb[0].mxu0 %v405_v48  ;;  %v408_v25 = vld [vmem:[%s2626_s11 + $0x18] sm:$0xff]  ;;  %v1810_v31 = vpack.c.bf16 %v452_v23, %v448_v22  ;;  %v454_v33 = vld [vmem:[#allocation7 + $0x148] sm:$0xff]  ;;  %v1780_v37 = vpack.c.bf16 %v449_v29, %v445_v28  ;;  %v1812_v38 = vpack.c.bf16 %v451_v32, %v447_v30  ;;  %v453_v40 = vld [vmem:[#allocation7 + $0x140] sm:$0xff]  ;;  %s1408_s11 = scalar_lea.sflag [#allocation12], %s2619_s15 }
  0xc2   : > { %695 = vmatmul.mubr.f32.vlgmr.msra.gmra.mrb[0].mxu1 %v405_v48  ;;  %1765 = vmatpush1.bf16.msra.mxu0 %v1764_v49  ;;  %v458_v34 = vld [vmem:[#allocation7 + $0x168] sm:$0xff]  ;;  %v456_v35 = vld [vmem:[#allocation7 + $0x158] sm:$0xff]  ;;  %v457_v41 = vld [vmem:[#allocation7 + $0x160] sm:$0xff] }
  0xc3   : > { %1797 = vmatpush1.bf16.msra.mxu1 %v1796_v50  ;;  %1767 = vmatprep.subr.bf16.mxu0 %v1766_v51  ;;  %v460_v36 = vld [vmem:[#allocation7 + $0x178] sm:$0xff]  ;;  %v1782_v39 = vpack.c.bf16 %v458_v34, %v454_v33  ;;  %v455_v42 = vld [vmem:[#allocation7 + $0x150] sm:$0xff]  ;;  %v462_v45 = vld [vmem:[#allocation7 + $0x188] sm:$0xff]  ;;  %v1784_v49 = vpack.c.bf16 %v457_v41, %v453_v40 }
  0xc4   : > { %1799 = vmatprep.subr.bf16.mxu1 %v1798_v55  ;;  %611 = vmatprep.mubr.f32.mxu0 %v2354_v0  ;;  %v1814_v43 = vpack.c.bf16 %v460_v36, %v456_v35  ;;  %v459_v44 = vld [vmem:[#allocation7 + $0x170] sm:$0xff]  ;;  %v466_v46 = vld [vmem:[#allocation7 + $0x1a8] sm:$0xff]  ;;  %v464_v47 = vld [vmem:[#allocation7 + $0x198] sm:$0xff] }
  0xc5   : > { %700 = vmatprep.mubr.f32.mxu1 %v2354_v0  ;;  %612 = vmatmul.mubr.f32.gmra.mrb[2].mxu0 %v406_v62  ;;  %v468_v48 = vld [vmem:[#allocation7 + $0x1b8] sm:$0xff]  ;;  %v1816_v50 = vpack.c.bf16 %v459_v44, %v455_v42  ;;  %v1786_v51 = vpack.c.bf16 %v466_v46, %v462_v45  ;;  %v461_v52 = vld [vmem:[#allocation7 + $0x180] sm:$0xff]  ;;  %v463_v54 = vld [vmem:[#allocation7 + $0x190] sm:$0xff] }
  0xc6   : > { %1769 = vmatpush1.bf16.msra.mxu0 %v1768_v61  ;;  %701 = vmatmul.mubr.f32.gmra.mrb[2].mxu1 %v406_v62  ;;  %v465_v53 = vld [vmem:[#allocation7 + $0x1a0] sm:$0xff]  ;;  %v1818_v55 = vpack.c.bf16 %v468_v48, %v464_v47  ;;  %v467_v56 = vld [vmem:[#allocation7 + $0x1b0] sm:$0xff]  ;;  %v470_v57 = vld [vmem:[#allocation7 + $0x1c8] sm:$0xff] }
  0xc7   : > { %1801 = vmatpush1.bf16.msra.mxu1 %v1800_v63  ;;  %1771 = vmatprep.subr.bf16.mxu0 %v1770_v1  ;;  %v474_v58 = vld [vmem:[#allocation7 + $0x1e8] sm:$0xff]  ;;  %v472_v59 = vld [vmem:[#allocation7 + $0x1d8] sm:$0xff]  ;;  %v1788_v61 = vpack.c.bf16 %v465_v53, %v461_v52  ;;  %v1820_v62 = vpack.c.bf16 %v467_v56, %v463_v54  ;;  %v469_v1 = vld [vmem:[#allocation7 + $0x1c0] sm:$0xff] }
  0xc8   : > { %1803 = vmatprep.subr.bf16.mxu1 %v1802_v5  ;;  %617 = vmatprep.mubr.f32.mxu0 %v2354_v0  ;;  %v476_v60 = vld [vmem:[#allocation7 + $0x1f8] sm:$0xff]  ;;  %v1790_v63 = vpack.c.bf16 %v474_v58, %v470_v57  ;;  %v473_v2 = vld [vmem:[#allocation7 + $0x1e0] sm:$0xff]  ;;  %v471_v3 = vld [vmem:[#allocation7 + $0x1d0] sm:$0xff] }
  0xc9   : > { %706 = vmatprep.mubr.f32.mxu1 %v2354_v0  ;;  %618 = vmatmul.mubr.f32.gmra.mrb[4].mxu0 %v407_v12  ;;  %v1822_v4 = vpack.c.bf16 %v476_v60, %v472_v59  ;;  %v475_v5 = vld [vmem:[#allocation7 + $0x1f0] sm:$0xff]  ;;  %v898_v6 = vld [vmem:[#allocation7 + $0x408] sm:$0xff]  ;;  %v900_v8 = vld [vmem:[#allocation7 + $0x418] sm:$0xff]  ;;  %v1792_v10 = vpack.c.bf16 %v473_v2, %v469_v1 }
  0xca   : > { %1773 = vmatpush1.bf16.msra.mxu0 %v1772_v11  ;;  %707 = vmatmul.mubr.f32.gmra.mrb[4].mxu1 %v407_v12  ;;  %v902_v7 = vld [vmem:[#allocation7 + $0x428] sm:$0xff]  ;;  %v904_v9 = vld [vmem:[#allocation7 + $0x438] sm:$0xff]  ;;  %v1824_v11 = vpack.c.bf16 %v475_v5, %v471_v3  ;;  %v899_v15 = vld [vmem:[#allocation7 + $0x410] sm:$0xff] }
  0xcb   : > { %1805 = vmatpush1.bf16.msra.mxu1 %v1804_v13  ;;  %1775 = vmatprep.subr.bf16.mxu0 %v1774_v14  ;;  %v1826_v12 = vpack.c.bf16 %v902_v7, %v898_v6  ;;  %v897_v13 = vld [vmem:[#allocation7 + $0x400] sm:$0xff]  ;;  %v1858_v16 = vpack.c.bf16 %v904_v9, %v900_v8  ;;  %v903_v17 = vld [vmem:[#allocation7 + $0x430] sm:$0xff]  ;;  %v910_v19 = vld [vmem:[#allocation7 + $0x468] sm:$0xff] }
  0xcc   : > { %1807 = vmatprep.subr.bf16.mxu1 %v1806_v18  ;;  %623 = vmatprep.mubr.f32.mxu0 %v2354_v0  ;;  %v901_v14 = vld [vmem:[#allocation7 + $0x420] sm:$0xff]  ;;  %v906_v18 = vld [vmem:[#allocation7 + $0x448] sm:$0xff]  ;;  %v908_v20 = vld [vmem:[#allocation7 + $0x458] sm:$0xff] }
  0xcd   : > { %712 = vmatprep.mubr.f32.mxu1 %v2354_v0  ;;  %624 = vmatmul.mubr.f32.gmra.mrb[6].mxu0 %v408_v25  ;;  %v912_v21 = vld [vmem:[#allocation7 + $0x478] sm:$0xff]  ;;  %v401_v22 = vld [vmem:[%s2676_s21] sm:$0xff]  ;;  %v1828_v23 = vpack.c.bf16 %v901_v14, %v897_v13  ;;  %v907_v28 = vld [vmem:[#allocation7 + $0x450] sm:$0xff] }
  0xce   : > { %1777 = vmatpush1.bf16.msra.mxu0 %v1776_v24  ;;  %713 = vmatmul.mubr.f32.gmra.mrb[6].mxu1 %v408_v25  ;;  %v1860_v24 = vpack.c.bf16 %v903_v17, %v899_v15  ;;  %v1830_v25 = vpack.c.bf16 %v910_v19, %v906_v18  ;;  %v1862_v29 = vpack.c.bf16 %v912_v21, %v908_v20  ;;  %v911_v30 = vld [vmem:[#allocation7 + $0x470] sm:$0xff]  ;;  %v918_v32 = vld [vmem:[#allocation7 + $0x4a8] sm:$0xff]  ;;  %v916_v33 = vld [vmem:[#allocation7 + $0x498] sm:$0xff] }
  0xcf   : > { %1809 = vmatpush1.bf16.msra.mxu1 %v1808_v26  ;;  %1779 = vmatprep.subr.bf16.mxu0 %v1778_v27  ;;  %v905_v26 = vld [vmem:[#allocation7 + $0x440] sm:$0xff]  ;;  %v920_v34 = vld [vmem:[#allocation7 + $0x4b8] sm:$0xff]  ;;  %v402_v36 = vld [vmem:[%s2676_s21 + $0x8] sm:$0xff] }
  0xd0   : > { %1811 = vmatprep.subr.bf16.mxu1 %v1810_v31  ;;  %783 = vmatprep.mubr.f32.mxu0 %v2354_v0  ;;  %v909_v27 = vld [vmem:[#allocation7 + $0x460] sm:$0xff]  ;;  %v914_v31 = vld [vmem:[#allocation7 + $0x488] sm:$0xff]  ;;  %v915_v41 = vld [vmem:[#allocation7 + $0x490] sm:$0xff]  ;;  %v1866_v42 = vpack.c.bf16 %v920_v34, %v916_v33 }
  0xd1   : > { %872 = vmatprep.mubr.f32.mxu1 %v2354_v0  ;;  %v1832_v35 = vpack.c.bf16 %v909_v27, %v905_v26  ;;  %v917_v40 = vld [vmem:[#allocation7 + $0x4a0] sm:$0xff]  ;;  %v922_v44 = vld [vmem:[#allocation7 + $0x4c8] sm:$0xff]  ;;  %v924_v46 = vld [vmem:[#allocation7 + $0x4d8] sm:$0xff] }
  0xd2   : > { %1781 = vmatpush1.bf16.msra.mxu0 %v1780_v37  ;;  %v1864_v37 = vpack.c.bf16 %v911_v30, %v907_v28  ;;  %v926_v45 = vld [vmem:[#allocation7 + $0x4e8] sm:$0xff]  ;;  %v928_v47 = vld [vmem:[#allocation7 + $0x4f8] sm:$0xff]  ;;  %v921_v52 = vld [vmem:[#allocation7 + $0x4c0] sm:$0xff] }
  0xd3   : > { %1813 = vmatpush1.bf16.msra.mxu1 %v1812_v38  ;;  %1783 = vmatprep.subr.bf16.mxu0 %v1782_v39  ;;  %v1834_v38 = vpack.c.bf16 %v918_v32, %v914_v31  ;;  %v913_v39 = vld [vmem:[#allocation7 + $0x480] sm:$0xff]  ;;  %v923_v54 = vld [vmem:[#allocation7 + $0x4d0] sm:$0xff]  ;;  %v930_v57 = vld [vmem:[#allocation7 + $0x508] sm:$0xff] }
  0xd4   : > { %1815 = vmatprep.subr.bf16.mxu1 %v1814_v43  ;;  %v919_v43 = vld [vmem:[#allocation7 + $0x4b0] sm:$0xff]  ;;  %v1836_v48 = vpack.c.bf16 %v917_v40, %v913_v39  ;;  %v925_v53 = vld [vmem:[#allocation7 + $0x4e0] sm:$0xff]  ;;  %v934_v58 = vld [vmem:[#allocation7 + $0x528] sm:$0xff] }
  0xd5   : > { %v927_v56 = vld [vmem:[#allocation7 + $0x4f0] sm:$0xff]  ;;  %v932_v59 = vld [vmem:[#allocation7 + $0x518] sm:$0xff]  ;;  %v1842_v1 = vpack.c.bf16 %v934_v58, %v930_v57  ;;  %v929_v2 = vld [vmem:[#allocation7 + $0x500] sm:$0xff] }
  0xd6   : > { %1785 = vmatpush1.bf16.msra.mxu0 %v1784_v49  ;;  %v403_v49 = vld [vmem:[%s2676_s21 + $0x10] sm:$0xff]  ;;  %v936_v60 = vld [vmem:[#allocation7 + $0x538] sm:$0xff]  ;;  %v933_v3 = vld [vmem:[#allocation7 + $0x520] sm:$0xff] }
  0xd7   : > { %1817 = vmatpush1.bf16.msra.mxu1 %v1816_v50  ;;  %1787 = vmatprep.subr.bf16.mxu0 %v1786_v51  ;;  %v1868_v50 = vpack.c.bf16 %v919_v43, %v915_v41  ;;  %v1838_v51 = vpack.c.bf16 %v926_v45, %v922_v44  ;;  %v1874_v5 = vpack.c.bf16 %v936_v60, %v932_v59  ;;  %v935_v6 = vld [vmem:[#allocation7 + $0x530] sm:$0xff]  ;;  %v938_v7 = vld [vmem:[#allocation7 + $0x548] sm:$0xff]  ;;  %v940_v9 = vld [vmem:[#allocation7 + $0x558] sm:$0xff] }
  0xd8   : > { %1819 = vmatprep.subr.bf16.mxu1 %v1818_v55  ;;  %v1870_v55 = vpack.c.bf16 %v928_v47, %v924_v46  ;;  %v942_v8 = vld [vmem:[#allocation7 + $0x568] sm:$0xff]  ;;  %v937_v14 = vld [vmem:[#allocation7 + $0x540] sm:$0xff]  ;;  %v943_v18 = vld [vmem:[#allocation7 + $0x570] sm:$0xff] }
  0xd9   : > { %v1846_v13 = vpack.c.bf16 %v942_v8, %v938_v7  ;;  %v941_v15 = vld [vmem:[#allocation7 + $0x560] sm:$0xff]  ;;  %v946_v19 = vld [vmem:[#allocation7 + $0x588] sm:$0xff]  ;;  %v948_v21 = vld [vmem:[#allocation7 + $0x598] sm:$0xff] }
  0xda   : > { %1789 = vmatpush1.bf16.msra.mxu0 %v1788_v61  ;;  %v1840_v61 = vpack.c.bf16 %v925_v53, %v921_v52  ;;  %v950_v20 = vld [vmem:[#allocation7 + $0x5a8] sm:$0xff]  ;;  %v945_v26 = vld [vmem:[#allocation7 + $0x580] sm:$0xff]  ;;  %v947_v28 = vld [vmem:[#allocation7 + $0x590] sm:$0xff] }
  0xdb   : > { %1821 = vmatpush1.bf16.msra.mxu1 %v1820_v62  ;;  %1791 = vmatprep.subr.bf16.mxu0 %v1790_v63  ;;  %v404_v62 = vld [vmem:[%s2676_s21 + $0x18] sm:$0xff]  ;;  %v1872_v63 = vpack.c.bf16 %v927_v56, %v923_v54  ;;  %v949_v27 = vld [vmem:[#allocation7 + $0x5a0] sm:$0xff]  ;;  %v951_v30 = vld [vmem:[#allocation7 + $0x5b0] sm:$0xff] }
  0xdc   : > { %1823 = vmatprep.subr.bf16.mxu1 %v1822_v4  ;;  %v931_v4 = vld [vmem:[#allocation7 + $0x510] sm:$0xff]  ;;  %v954_v31 = vld [vmem:[#allocation7 + $0x5c8] sm:$0xff]  ;;  %v956_v33 = vld [vmem:[#allocation7 + $0x5d8] sm:$0xff] }
  0xdd   : > { %v958_v32 = vld [vmem:[#allocation7 + $0x5e8] sm:$0xff]  ;;  %v960_v34 = vld [vmem:[#allocation7 + $0x5f8] sm:$0xff]  ;;  %v957_v39 = vld [vmem:[#allocation7 + $0x5e0] sm:$0xff] }
  0xde   : > { %1793 = vmatpush1.bf16.msra.mxu0 %v1792_v10  ;;  %v944_v10 = vld [vmem:[#allocation7 + $0x578] sm:$0xff]  ;;  %v1886_v40 = vpack.c.bf16 %v960_v34, %v956_v33  ;;  %v955_v41 = vld [vmem:[#allocation7 + $0x5d0] sm:$0xff]  ;;  %v2691_v45 = vld [vmem:[%s2634_s9] sm:$0xff] }
  0xdf   : > { %1825 = vmatpush1.bf16.msra.mxu1 %v1824_v11  ;;  %1827 = vmatprep.subr.bf16.mxu0 %v1826_v12  ;;  %v1844_v11 = vpack.c.bf16 %v933_v3, %v929_v2  ;;  %v1876_v12 = vpack.c.bf16 %v935_v6, %v931_v4  ;;  %v1878_v17 = vpack.c.bf16 %v944_v10, %v940_v9  ;;  %v2697_v46 = vld [vmem:[%s2634_s9 + $0x8] sm:$0xff]  ;;  %v2704_v47 = vld [vmem:[%s2634_s9 + $0x10] sm:$0xff]  ;;  %v1257_v54 = vld [vmem:[%s2915_s4] sm:$0xff] }
  0xe0   : > { %1859 = vmatprep.subr.bf16.mxu1 %v1858_v16  ;;  %v939_v16 = vld [vmem:[#allocation7 + $0x550] sm:$0xff]  ;;  %v1260_v57 = vld [vmem:[%s2915_s4 + $0x18] sm:$0xff]  ;;  %v1261_v59 = vld [vmem:[%s2915_s4 + $0x20] sm:$0xff] }
  0xe1   : > { %784 = vmatmul.mubr.f32.vlgmr.msra.gmra.mrb[0].mxu0 %v401_v22  ;;  %v1259_v56 = vld [vmem:[%s2915_s4 + $0x10] sm:$0xff]  ;;  %v1262_v60 = vld [vmem:[%s2915_s4 + $0x28] sm:$0xff]  ;;  %v1265_v2 = vld [vmem:[%s2915_s4 + $0x40] sm:$0xff] }
  0xe2   : > { %873 = vmatmul.mubr.f32.vlgmr.msra.gmra.mrb[0].mxu1 %v401_v22  ;;  %1829 = vmatpush1.bf16.msra.mxu0 %v1828_v23  ;;  %v952_v22 = vld [vmem:[#allocation7 + $0x5b8] sm:$0xff]  ;;  %v1848_v23 = vpack.c.bf16 %v941_v15, %v937_v14  ;;  %v1894_v58 = vpack.c.bf16 %v1260_v57, %v1259_v56  ;;  %v1266_v3 = vld [vmem:[%s2915_s4 + $0x48] sm:$0xff]  ;;  %v1269_v8 = vld [vmem:[%s2915_s4 + $0x60] sm:$0xff] }
  0xe3   : > { %1861 = vmatpush1.bf16.msra.mxu1 %v1860_v24  ;;  %1831 = vmatprep.subr.bf16.mxu0 %v1830_v25  ;;  %v1880_v24 = vpack.c.bf16 %v943_v18, %v939_v16  ;;  %v1850_v25 = vpack.c.bf16 %v950_v20, %v946_v19  ;;  %v1906_v4 = vpack.c.bf16 %v1266_v3, %v1265_v2  ;;  %v1268_v6 = vld [vmem:[%s2915_s4 + $0x58] sm:$0xff]  ;;  %v1270_v9 = vld [vmem:[%s2915_s4 + $0x68] sm:$0xff] }
  0xe4   : > { %1863 = vmatprep.subr.bf16.mxu1 %v1862_v29  ;;  %789 = vmatprep.mubr.f32.mxu0 %v2354_v0  ;;  %v1882_v29 = vpack.c.bf16 %v952_v22, %v948_v21  ;;  %v1914_v10 = vpack.c.bf16 %v1270_v9, %v1269_v8 }
  0xe5   : > { %878 = vmatprep.mubr.f32.mxu1 %v2354_v0  ;;  %790 = vmatmul.mubr.f32.gmra.mrb[2].mxu0 %v402_v36 }
  0xe6   : > { %1833 = vmatpush1.bf16.msra.mxu0 %v1832_v35  ;;  %879 = vmatmul.mubr.f32.gmra.mrb[2].mxu1 %v402_v36  ;;  %v1852_v35 = vpack.c.bf16 %v949_v27, %v945_v26  ;;  %v1884_v36 = vpack.c.bf16 %v951_v30, %v947_v28 }
  0xe7   : > { %1865 = vmatpush1.bf16.msra.mxu1 %v1864_v37  ;;  %1835 = vmatprep.subr.bf16.mxu0 %v1834_v38  ;;  %v1854_v37 = vpack.c.bf16 %v958_v32, %v954_v31  ;;  %v953_v38 = vld [vmem:[#allocation7 + $0x5c0] sm:$0xff] }
  0xe8   : > { %1867 = vmatprep.subr.bf16.mxu1 %v1866_v42  ;;  %795 = vmatprep.mubr.f32.mxu0 %v2354_v0  ;;  %v959_v42 = vld [vmem:[#allocation7 + $0x5f0] sm:$0xff]  ;;  %v1856_v43 = vpack.c.bf16 %v957_v39, %v953_v38 }
  0xe9   : > { %884 = vmatprep.mubr.f32.mxu1 %v2354_v0  ;;  %796 = vmatmul.mubr.f32.gmra.mrb[4].mxu0 %v403_v49  ;;  %v1888_v44 = vpack.c.bf16 %v959_v42, %v955_v41 }
  0xea   : > { %1837 = vmatpush1.bf16.msra.mxu0 %v1836_v48  ;;  %885 = vmatmul.mubr.f32.gmra.mrb[4].mxu1 %v403_v49  ;;  %v2711_v48 = vld [vmem:[%s2634_s9 + $0x18] sm:$0xff]  ;;  %v1157_v49 = vlaneseq  ;;  %s2238_s9 = sshll.u32 %s2355_s5, 4  ;;  %s2239_s9 = int_to_ptr.vmem [resolvable:$false] %s2238_s9 }
  0xeb   : > { %1869 = vmatpush1.bf16.msra.mxu1 %v1868_v50  ;;  %1839 = vmatprep.subr.bf16.mxu0 %v1838_v51  ;;  %v2718_v51 = vld [vmem:[#allocation8] sm:$0xf]  ;;  %s2240_s30 = scalar_lea.vmem %s2239_s9, 1024  ;;  %p2241_p5 = scmp.lt.s32.totalorder %s2812_s3, %s2239_s9 }
  0xec   : > { %1871 = vmatprep.subr.bf16.mxu1 %v1870_v55  ;;  %801 = vmatprep.mubr.f32.mxu0 %v2354_v0  ;;  %v2716_v50 = vshrl.u32 %v1157_v49, 7  ;;  %p2242_p3 = scmp.lt.s32.totalorder %s2240_s30, %s2234_s1 }
  0xed   : > { %890 = vmatprep.mubr.f32.mxu1 %v2354_v0  ;;  %802 = vmatmul.mubr.f32.gmra.mrb[6].mxu0 %v404_v62 }
  0xee   : > { %1841 = vmatpush1.bf16.msra.mxu0 %v1840_v61  ;;  %891 = vmatmul.mubr.f32.gmra.mrb[6].mxu1 %v404_v62  ;;  %v1171_v52 = vsub.s32 3, %v2716_v50  ;;  %v1898_v61 = vpack.c.bf16 %v1262_v60, %v1261_v59  ;;  %v1263_v62 = vld [vmem:[%s2915_s4 + $0x30] sm:$0xff]  ;;  %v1159_v14 = vsub.s32 0, %v2716_v50  ;;  %v1163_v15 = vsub.s32 1, %v2716_v50  ;;  %p2243_p7 = por %p2242_p3, %p2241_p5 }
  0xef   : > { %1873 = vmatpush1.bf16.msra.mxu1 %v1872_v63  ;;  %1843 = vmatprep.subr.bf16.mxu0 %v1842_v1  ;;  %v1264_v63 = vld [vmem:[%s2915_s4 + $0x38] sm:$0xff]  ;;  %v1167_v26 = vsub.s32 2, %v2716_v50 }
  0xf0   : > { %1875 = vmatprep.subr.bf16.mxu1 %v1874_v5  ;;  %1025 = vmatprep.mubr.f32.mxu0 %v2354_v0  ;;  %v2722_v53 = vrot.slane %v2718_v51, %v1171_v52  ;;  %v1902_v1 = vpack.c.bf16 %v1264_v63, %v1263_v62  ;;  %v1267_v5 = vld [vmem:[%s2915_s4 + $0x50] sm:$0xff]  ;;  %v1160_v16 = vrot.slane %v2718_v51, %v1159_v14  ;;  %p2244_p9 = pnand %p2243_p7, %p2237_p4 }
  0xf1   : > { %1114 = vmatprep.mubr.f32.mxu1 %v2354_v0  ;;  %v1910_v7 = vpack.c.bf16 %v1268_v6, %v1267_v5 }
  0xf2   : > { %1845 = vmatpush1.bf16.msra.mxu0 %v1844_v11  ;;  %v1271_v11 = vld [vmem:[%s2915_s4 + $0x70] sm:$0xff] }
  0xf3   : > { %1877 = vmatpush1.bf16.msra.mxu1 %v1876_v12  ;;  %1847 = vmatprep.subr.bf16.mxu0 %v1846_v13  ;;  %v1272_v12 = vld [vmem:[%s2915_s4 + $0x78] sm:$0xff] }
  0xf4   : > { %1879 = vmatprep.subr.bf16.mxu1 %v1878_v17  ;;  %v1918_v13 = vpack.c.bf16 %v1272_v12, %v1271_v11  ;;  %v1164_v17 = vrot.slane %v2718_v51, %v1163_v15 }
  0xf6   : > { %1849 = vmatpush1.bf16.msra.mxu0 %v1848_v23 }
  0xf7   : > { %1881 = vmatpush1.bf16.msra.mxu1 %v1880_v24  ;;  %1851 = vmatprep.subr.bf16.mxu0 %v1850_v25 }
  0xf8   : > { %1883 = vmatprep.subr.bf16.mxu1 %v1882_v29 }
  0xfa   : > { %1853 = vmatpush1.bf16.msra.mxu0 %v1852_v35 }
  0xfb   : > { %1885 = vmatpush1.bf16.msra.mxu1 %v1884_v36  ;;  %1855 = vmatprep.subr.bf16.mxu0 %v1854_v37  ;;  %v1168_v36 = vrot.slane %v2718_v51, %v1167_v26 }
  0xfc   : > { %1887 = vmatprep.subr.bf16.mxu1 %v1886_v40 }
  0xfe   : > { %1857 = vmatpush1.bf16.msra.mxu0 %v1856_v43 }
  0xff   : > { %1889 = vmatpush1.bf16.msra.mxu1 %v1888_v44 }
 0x101   : > { %1026 = vmatmul.mubr.f32.vlgmr.msra.gmra.mrb[0].mxu0 %v2691_v45 }
 0x102   : > { %1115 = vmatmul.mubr.f32.vlgmr.msra.gmra.mrb[0].mxu1 %v2691_v45  ;;  %1031 = vmatprep.mubr.f32.mxu0 %v2354_v0 }
 0x103   : > { %1120 = vmatprep.mubr.f32.mxu1 %v2354_v0 }
 0x105   : > { %1032 = vmatmul.mubr.f32.gmra.mrb[2].mxu0 %v2697_v46 }
 0x106   : > { %1121 = vmatmul.mubr.f32.gmra.mrb[2].mxu1 %v2697_v46  ;;  %1037 = vmatprep.mubr.f32.mxu0 %v2354_v0 }
 0x107   : > { %1126 = vmatprep.mubr.f32.mxu1 %v2354_v0 }
 0x109   : > { %1038 = vmatmul.mubr.f32.gmra.mrb[4].mxu0 %v2704_v47 }
 0x10a   : > { %1127 = vmatmul.mubr.f32.gmra.mrb[4].mxu1 %v2704_v47  ;;  %1043 = vmatprep.mubr.f32.mxu0 %v2354_v0 }
 0x10b   : > { %1132 = vmatprep.mubr.f32.mxu1 %v2354_v0  ;;  %v1258_v0 = vld [vmem:[%s2915_s4 + $0x8] sm:$0xff] }
 0x10c   : > { %v1890_v55 = vpack.c.bf16 %v1258_v0, %v1257_v54 }
 0x10d   : > { %1044 = vmatmul.mubr.f32.gmra.mrb[6].mxu0 %v2711_v48 }
 0x10e   : > { %1133 = vmatmul.mubr.f32.gmra.mrb[6].mxu1 %v2711_v48  ;;  %1891 = vmatprep.subr.bf16.mxu0 %v1890_v55 }
 0x10f   : > { %1922 = vmatprep.subr.bf16.mxu1 %v1890_v55  ;;  %1893 = vmatpush3.bf16.msra.mxu0 %v1890_v55 }
 0x110   : > { %1930 = vmatpush3.bf16.msra.mxu1 %v1890_v55  ;;  %1895 = vmatprep.subr.bf16.mxu0 %v1894_v58 }
 0x111   : > { %1923 = vmatprep.subr.bf16.mxu1 %v1894_v58 }
 0x113   : > { %1897 = vmatpush3.bf16.msra.mxu0 %v1894_v58 }
 0x114   : > { %1931 = vmatpush3.bf16.msra.mxu1 %v1894_v58  ;;  %1899 = vmatprep.subr.bf16.mxu0 %v1898_v61 }
 0x115   : > { %1924 = vmatprep.subr.bf16.mxu1 %v1898_v61 }
 0x117   : > { %1901 = vmatpush3.bf16.msra.mxu0 %v1898_v61 }
 0x118   : > { %1932 = vmatpush3.bf16.msra.mxu1 %v1898_v61  ;;  %1903 = vmatprep.subr.bf16.mxu0 %v1902_v1 }
 0x119   : > { %1925 = vmatprep.subr.bf16.mxu1 %v1902_v1 }
 0x11b   : > { %1905 = vmatpush3.bf16.msra.mxu0 %v1902_v1 }
 0x11c   : > { %1933 = vmatpush3.bf16.msra.mxu1 %v1902_v1  ;;  %1907 = vmatprep.subr.bf16.mxu0 %v1906_v4 }
 0x11d   : > { %1926 = vmatprep.subr.bf16.mxu1 %v1906_v4 }
 0x11f   : > { %1909 = vmatpush3.bf16.msra.mxu0 %v1906_v4 }
 0x120   : > { %1934 = vmatpush3.bf16.msra.mxu1 %v1906_v4  ;;  %1911 = vmatprep.subr.bf16.mxu0 %v1910_v7 }
 0x121   : > { %1927 = vmatprep.subr.bf16.mxu1 %v1910_v7 }
 0x123   : > { %1913 = vmatpush3.bf16.msra.mxu0 %v1910_v7 }
 0x124   : > { %1935 = vmatpush3.bf16.msra.mxu1 %v1910_v7  ;;  %1915 = vmatprep.subr.bf16.mxu0 %v1914_v10 }
 0x125   : > { %1928 = vmatprep.subr.bf16.mxu1 %v1914_v10 }
 0x127   : > { %1917 = vmatpush3.bf16.msra.mxu0 %v1914_v10 }
 0x128   : > { %1936 = vmatpush3.bf16.msra.mxu1 %v1914_v10  ;;  %1919 = vmatprep.subr.bf16.mxu0 %v1918_v13 }
 0x129   : > { %1929 = vmatprep.subr.bf16.mxu1 %v1918_v13 }
 0x12b   : > { %1921 = vmatpush3.bf16.msra.mxu0 %v1918_v13 }
 0x12c   : > { %1937 = vmatpush3.bf16.msra.mxu1 %v1918_v13 }
 0x1d4   : > { %v1027_v18 = vpop.f32.mrb[0].mxu0 }
 0x1d5   : > { %v1177_v19 = vadd.f32 %v1160_v16, %v1027_v18  ;;  %v1116_v20 = vpop.f32.mrb[0].mxu1  ;;  %v1029_v21 = vpop.f32.mrb[1].mxu0 }
 0x1d6   : > { %v1178_v22 = vadd.f32 %v1164_v17, %v1029_v21  ;;  %v1118_v23 = vpop.f32.mrb[1].mxu1  ;;  %v1179_v50 = vadd.f32 %v1168_v36, %v1116_v20 }
 0x1d7   : > { %v1616_v24 = vmul.f32 -1.442695, %v1177_v19  ;;  %v2777_v25 = vadd.f32 %v2722_v53, %v1118_v23 }
 0x1d8   : > { %v1620_v27 = vmul.f32 -1.442695, %v1178_v22  ;;  %v1033_v28 = vpop.f32.mrb[2].mxu0 }
 0x1d9   : > { %2054 = vpow2.f32 %v1616_v24  ;;  %v1181_v29 = vadd.f32 %v1160_v16, %v1033_v28  ;;  %v1122_v30 = vpop.f32.mrb[2].mxu1  ;;  %v1035_v31 = vpop.f32.mrb[3].mxu0 }
 0x1da   : > { %2056 = vpow2.f32 %v1620_v27  ;;  %v1182_v32 = vadd.f32 %v1164_v17, %v1035_v31  ;;  %v1124_v33 = vpop.f32.mrb[3].mxu1  ;;  %v1183_v2 = vadd.f32 %v1168_v36, %v1122_v30 }
 0x1db   : > { %v1617_v34 = vmul.f32 -1.442695, %v1181_v29  ;;  %v2781_v35 = vadd.f32 %v2722_v53, %v1124_v33 }
 0x1dc   : > { %v1621_v37 = vmul.f32 -1.442695, %v1182_v32  ;;  %v1039_v38 = vpop.f32.mrb[4].mxu0 }
 0x1dd   : > { %2058 = vpow2.f32 %v1617_v34  ;;  %v1185_v39 = vadd.f32 %v1160_v16, %v1039_v38  ;;  %v1128_v40 = vpop.f32.mrb[4].mxu1  ;;  %v1041_v41 = vpop.f32.mrb[5].mxu0 }
 0x1de   : > { %2060 = vpow2.f32 %v1621_v37  ;;  %v1186_v42 = vadd.f32 %v1164_v17, %v1041_v41  ;;  %v1130_v43 = vpop.f32.mrb[5].mxu1  ;;  %v1187_v7 = vadd.f32 %v1168_v36, %v1128_v40 }
 0x1df   : > { %v1618_v44 = vmul.f32 -1.442695, %v1185_v39  ;;  %v2785_v49 = vadd.f32 %v2722_v53, %v1130_v43 }
 0x1e0   : > { %v1622_v52 = vmul.f32 -1.442695, %v1186_v42  ;;  %v1045_v54 = vpop.f32.mrb[6].mxu0 }
 0x1e1   : > { %2062 = vpow2.f32 %v1618_v44  ;;  %v1189_v0 = vadd.f32 %v1160_v16, %v1045_v54  ;;  %v1134_v55 = vpop.f32.mrb[6].mxu1  ;;  %v1047_v51 = vpop.f32.mrb[7].mxu0 }
 0x1e2   : > { %2064 = vpow2.f32 %v1622_v52  ;;  %v1190_v56 = vadd.f32 %v1164_v17, %v1047_v51  ;;  %v1136_v57 = vpop.f32.mrb[7].mxu1  ;;  %v1191_v11 = vadd.f32 %v1168_v36, %v1134_v55 }
 0x1e3   : > { %v2055_v58 = vpop.eup %2054  ;;  %v1619_v59 = vmul.f32 -1.442695, %v1189_v0  ;;  %v2788_v60 = vadd.f32 %v2722_v53, %v1136_v57  ;;  %2066 = vtanh.f32 %v1179_v50 }
 0x1e4   : > { %v2057_v61 = vpop.eup %2056  ;;  %v1205_v62 = vadd.f32 1.0, %v2055_v58  ;;  %v1623_v63 = vmul.f32 -1.442695, %v1190_v56 }
 0x1e5   : > { %v1229_v1 = vadd.f32 1.0, %v2057_v61  ;;  %2068 = vpow2.f32 %v1619_v59 }
 0x1e6   : > { %2070 = vrcp.f32 %v1205_v62 }
 0x1e7   : > { %v2059_v3 = vpop.eup %2058  ;;  %2072 = vrcp.f32 %v1229_v1 }
 0x1e8   : > { %v2061_v4 = vpop.eup %2060  ;;  %v1206_v5 = vadd.f32 1.0, %v2059_v3  ;;  %2074 = vpow2.f32 %v1623_v63 }
 0x1e9   : > { %2076 = vtanh.f32 %v1183_v2  ;;  %v1230_v6 = vadd.f32 1.0, %v2061_v4 }
 0x1ea   : > { %2078 = vrcp.f32 %v1206_v5 }
 0x1eb   : > { %v2063_v8 = vpop.eup %2062  ;;  %2080 = vrcp.f32 %v1230_v6 }
 0x1ec   : > { %v2065_v53 = vpop.eup %2064  ;;  %v1207_v9 = vadd.f32 1.0, %v2063_v8  ;;  %2082 = vtanh.f32 %v1187_v7 }
 0x1ed   : > { %v1231_v10 = vadd.f32 1.0, %v2065_v53  ;;  %v2067_v12 = vpop.eup %2066 }
 0x1ee   : > { %2084 = vrcp.f32 %v1207_v9 }
 0x1ef   : > { %v2069_v13 = vpop.eup %2068  ;;  %2086 = vrcp.f32 %v1231_v10 }
 0x1f0   : > { %v2071_v14 = vpop.eup %2070  ;;  %v1208_v15 = vadd.f32 1.0, %v2069_v13  ;;  %2088 = vtanh.f32 %v1191_v11 }
 0x1f1   : > { %v2073_v16 = vpop.eup %2072  ;;  %v1249_v17 = vmul.f32 %v2071_v14, %v2067_v12 }
 0x1f2   : > { %v2075_v18 = vpop.eup %2074  ;;  %2090 = vrcp.f32 %v1208_v15  ;;  %v1241_v19 = vmul.f32 %v2073_v16, %v2691_v45 }
 0x1f3   : > { %v2077_v20 = vpop.eup %2076  ;;  %v1232_v21 = vadd.f32 1.0, %v2075_v18 }
 0x1f4   : > { %v2079_v22 = vpop.eup %2078  ;;  %v2791_v23 = vadd.f32 %v1249_v17, %v1241_v19 }
 0x1f5   : > { %v2081_v24 = vpop.eup %2080  ;;  %v1250_v26 = vmul.f32 %v2079_v22, %v2077_v20  ;;  %2092 = vrcp.f32 %v1232_v21 }
 0x1f6   : > { %1692 = vmatprep.mubr.f32.mxu0 %v2791_v23  ;;  %1398 = vst [vmem:[%s390_s16] sm:$0xff] %v2791_v23  ;;  %v1242_v27 = vmul.f32 %v2081_v24, %v2697_v46  ;;  %v2083_v28 = vpop.eup %2082 }
 0x1f8   : > { %v2085_v29 = vpop.eup %2084  ;;  %v2797_v30 = vadd.f32 %v1250_v26, %v1242_v27 }
 0x1f9   : > { %v2087_v45 = vpop.eup %2086  ;;  %v1251_v31 = vmul.f32 %v2085_v29, %v2083_v28 }
 0x1fa   : > { %1693 = vmatmul.mubr.f32.vlgmr.msra.gmra.mrb[8].mxu0 %v2797_v30  ;;  %1399 = vst [vmem:[%s390_s16 + $0x8] sm:$0xff] %v2797_v30  ;;  %v1243_v32 = vmul.f32 %v2087_v45, %v2704_v47  ;;  %v2089_v33 = vpop.eup %2088 }
 0x1fc   : > { %v2091_v34 = vpop.eup %2090  ;;  %v2802_v36 = vadd.f32 %v1251_v31, %v1243_v32 }
 0x1fd   : > { %v1252_v46 = vmul.f32 %v2091_v34, %v2089_v33 }
 0x1fe   : > { %1695 = vmatprep.mubr.f32.mxu1 %v2802_v36  ;;  %1400 = vst [vmem:[%s390_s16 + $0x10] sm:$0xff] %v2802_v36 }
 0x1ff   : > { %v2093_v37 = vpop.eup %2092 }
 0x200   : > { %v1244_v38 = vmul.f32 %v2093_v37, %v2711_v48 }
 0x202   : > { %v2807_v39 = vadd.f32 %v1252_v46, %v1244_v38 }
 0x204   : > { %1696 = vmatmul.mubr.f32.vlgmr.msra.gmra.mrb[8].mxu1 %v2807_v39  ;;  %1401 = vst [vmem:[%s390_s16 + $0x18] sm:$0xff] %v2807_v39 }
 0x205   : > { %2247 = shalt.err (!%p2244_p9)
}
 0x206   : > { %s2248_s12 = scalar_lea.hbm %s2819_s22, 512  ;;  %s2252_s23 = scalar_lea.hbm %s2918_s7, 1024 }
 0x207   : > { %p2249_p0 = scmp.ne.s32.totalorder %s2819_s22, %s2248_s12  ;;  %p2253_p1 = scmp.lt.u32.totalorder %s2819_s22, %s2918_s7 }
 0x208   : > { %p2254_p12 = scmp.lt.u32.totalorder %s2252_s23, %s2248_s12  ;;  %p2256_p13 = scmp.lt.u32.totalorder %s2248_s12, %s2819_s22 }
 0x209   : > { %p2250_p8 = pnand %p2249_p0, %p2944_p6 }
 0x20a   : > { %p2255_p2 = por %p2254_p12, %p2253_p1 }
 0x20b   : > { %p2251_p11 = pneg %p2250_p8 }
 0x20c   : > { %p2257_p10 = por %p2256_p13, %p2255_p2 }
 0x20e   : > { %p2258_p4 = pnand %p2257_p10, %p2251_p11 }
 0x210   : > { %2261 = shalt.err (!%p2258_p4)
}
 0x211   : > { %s2356_s10 = smov 128   ;;  %s2357_s14 = smov 8  }
 0x212   : > { %1983 = dma.vmem_to_hbm [thread:$0]  (%p2944_p6), %s2812_s3, 512, %s2819_s22, %s1408_s11, %s2356_s10, %s2356_s10, %s2357_s14  }
 0x213   : > { %s383_s3 = scalar_lea.vmem [#allocation10], %s2622_s20  ;;  %s2862_s5 = scalar_lea.hbm %s2917_s6, %s1638_s17 }
 0x214   : > { %s1421_s22 = sshll.u32 %s383_s3, 4  ;;  %s1403_s20 = scalar_lea.sflag [#allocation4], %s2619_s15  ;;  %s2864_s22 = int_to_ptr.vmem [resolvable:$true] %s1421_s22 }
 0x215   : > { %s2262_s9 = scalar_lea.vmem %s2864_s22, 512  ;;  %s2358_s30 = smov [#allocation10]  }
 0x216   : > { %p2263_p5 = scmp.ne.s32.totalorder %s2864_s22, %s2262_s9  ;;  %s2266_s28 = sshll.u32 %s2358_s30, 4  ;;  %s2267_s28 = int_to_ptr.vmem [resolvable:$false] %s2266_s28 }
 0x217   : > { %s2268_s12 = scalar_lea.vmem %s2267_s28, 1024  ;;  %p2269_p9 = scmp.lt.s32.totalorder %s2864_s22, %s2267_s28 }
 0x218   : > { %p2264_p3 = pnand %p2263_p5, %p2944_p6  ;;  %p2270_p0 = scmp.lt.s32.totalorder %s2268_s12, %s2262_s9 }
 0x21a   : > { %p2265_p7 = pneg %p2264_p3  ;;  %p2271_p8 = por %p2270_p0, %p2269_p9 }
 0x21c   : > { %p2272_p11 = pnand %p2271_p8, %p2265_p7 }
 0x2cd   : > { %v1694_v47 = vpop.f32.mrb[8].mxu0 }
 0x2ce   : > { %v1359_v48 = vadd.f32 %v1694_v47, %v2781_v35  ;;  %v1339_v40 = vpop.f32.mrb[9].mxu0 }
 0x2cf   : > { %v1358_v41 = vadd.f32 %v1339_v40, %v2777_v25 }
 0x2d0   : > { %v1625_v42 = vmul.f32 -1.442695, %v1359_v48 }
 0x2d1   : > { %v1624_v43 = vmul.f32 -1.442695, %v1358_v41 }
 0x2d2   : > { %2094 = vpow2.f32 %v1625_v42 }
 0x2d3   : > { %2096 = vpow2.f32 %v1624_v43 }
 0x2d4   : > { %2098 = vtanh.f32 %v2791_v23 }
 0x2d7   : > { %v1697_v44 = vpop.f32.mrb[8].mxu1 }
 0x2d8   : > { %v1361_v50 = vadd.f32 %v1697_v44, %v2788_v60  ;;  %v1349_v52 = vpop.f32.mrb[9].mxu1 }
 0x2d9   : > { %v1360_v54 = vadd.f32 %v1349_v52, %v2785_v49 }
 0x2da   : > { %v1627_v0 = vmul.f32 -1.442695, %v1361_v50 }
 0x2db   : > { %v1626_v55 = vmul.f32 -1.442695, %v1360_v54 }
 0x2dc   : > { %v2095_v51 = vpop.eup %2094  ;;  %2100 = vpow2.f32 %v1627_v0 }
 0x2dd   : > { %v2097_v35 = vpop.eup %2096  ;;  %v1375_v56 = vadd.f32 1.0, %v2095_v51  ;;  %2102 = vpow2.f32 %v1626_v55 }
 0x2de   : > { %2104 = vtanh.f32 %v2797_v30  ;;  %v1374_v25 = vadd.f32 1.0, %v2097_v35  ;;  %v2099_v57 = vpop.eup %2098 }
 0x2df   : > { %2106 = vrcp.f32 %v1375_v56 }
 0x2e0   : > { %2108 = vrcp.f32 %v1374_v25 }
 0x2e1   : > { %2110 = vtanh.f32 %v2802_v36 }
 0x2e2   : > { %2112 = vtanh.f32 %v2807_v39 }
 0x2e6   : > { %v2101_v58 = vpop.eup %2100 }
 0x2e7   : > { %v2103_v59 = vpop.eup %2102  ;;  %v1377_v49 = vadd.f32 1.0, %v2101_v58 }
 0x2e8   : > { %v2105_v60 = vpop.eup %2104  ;;  %v1376_v61 = vadd.f32 1.0, %v2103_v59 }
 0x2e9   : > { %v2107_v62 = vpop.eup %2106  ;;  %2114 = vrcp.f32 %v1377_v49 }
 0x2ea   : > { %v2109_v63 = vpop.eup %2108  ;;  %v1391_v1 = vmul.f32 %v2107_v62, %v2105_v60  ;;  %2116 = vrcp.f32 %v1376_v61 }
 0x2eb   : > { %v1390_v2 = vmul.f32 %v2109_v63, %v2099_v57  ;;  %v2111_v3 = vpop.eup %2110 }
 0x2ec   : > { %1395 = vst [vmem:[%s383_s3 + $0x8] sm:$0xff] %v1391_v1  ;;  %v2113_v4 = vpop.eup %2112 }
 0x2ed   : > { %1394 = vst [vmem:[%s383_s3] sm:$0xff] %v1390_v2 }
 0x2f3   : > { %v2115_v5 = vpop.eup %2114 }
 0x2f4   : > { %v2117_v6 = vpop.eup %2116  ;;  %v1393_v7 = vmul.f32 %v2115_v5, %v2113_v4 }
 0x2f5   : > { %v1392_v8 = vmul.f32 %v2117_v6, %v2111_v3 }
 0x2f6   : > { %1397 = vst [vmem:[%s383_s3 + $0x18] sm:$0xff] %v1393_v7 }
 0x2f7   : > { %1396 = vst [vmem:[%s383_s3 + $0x10] sm:$0xff] %v1392_v8 }
 0x2f8   : > { %2275 = shalt.err (!%p2272_p11)
}
 0x2f9   : > { %s2276_s17 = scalar_lea.hbm %s2862_s5, 512  ;;  %s2280_s23 = scalar_lea.hbm %s2917_s6, 1024 }
 0x2fa   : > { %p2277_p1 = scmp.ne.s32.totalorder %s2862_s5, %s2276_s17  ;;  %p2281_p13 = scmp.lt.u32.totalorder %s2862_s5, %s2917_s6 }
 0x2fb   : > { %p2282_p10 = scmp.lt.u32.totalorder %s2280_s23, %s2276_s17  ;;  %p2284_p5 = scmp.lt.u32.totalorder %s2276_s17, %s2862_s5 }
 0x2fc   : > { %p2278_p12 = pnand %p2277_p1, %p2944_p6 }
 0x2fd   : > { %p2283_p4 = por %p2282_p10, %p2281_p13 }
 0x2fe   : > { %p2279_p2 = pneg %p2278_p12 }
 0x2ff   : > { %p2285_p3 = por %p2284_p5, %p2283_p4 }
 0x301   : > { %p2286_p7 = pnand %p2285_p3, %p2279_p2 }
 0x303   : > { %2289 = shalt.err (!%p2286_p7)
}
 0x304   : > { %1982 = dma.vmem_to_hbm [thread:$0]  (%p2944_p6), %s2864_s22, 512, %s2862_s5, %s1403_s20, %s2356_s10, %s2356_s10, %s2357_s14  }
 0x305 PF: > { %s1452_s3 = sand.u32 1, %s2332_s24   ;;  %p2945_p9 = scmp.ne.s32.totalorder %s2927_s8, 0 }
 0x306   : > { %p2946_p0 = scmp.ge.s32.totalorder %s2344_s27, 2  ;;  %s1453_s11 = scalar_lea.sflag [#allocation4], %s1452_s3 }
 0x308   : > { %p2001_p8 = pnand %p2946_p0, %p2945_p9 }
 0x30a   : > { %2323 = dma.done.wait (!%p2001_p8), %s1453_s11, 512  }
 0x30b   : > { %2325 = vsyncadd (!%p2001_p8), %s1453_s11, 4294966784  ;;  %s1462_s13 = scalar_lea.sflag [#allocation12], %s1452_s3 }
 0x30c   : > { %2327 = dma.done.wait (!%p2001_p8), %s1462_s13, 512  }
 0x30d   : > { %2329 = vsyncadd (!%p2001_p8), %s1462_s13, 4294966784  ;;  %s2947_s15 = sld [smem:[#allocation19_spill]]  ;;  %p28_p6 = scmp.ge.s32.totalorder %s2509_s29, 4  }
 0x30e   : > { %s2948_s24 = smov %s2336_s25  ;;  %s2949_s25 = smov %s2340_s26 }
 0x30f   : > { %s2951_s27 = smov %s2509_s29  ;;  %30 = sbr.rel (!%p28_p6) target bundleno = 14 (0xe), region = 130 }
 0x313   : > { %s2950_s26 = smov %s2947_s15 }
 0x316   :  { %1467 = vsyncpa [#allocation3], 1 }
 0x317   :  { %1469 = vsyncpa [#allocation3 + $0x1], 1 }
 0x318   :  { %1470 = vsyncpa [#allocation6], 1 }
 0x319   :  { %1472 = vsyncpa [#allocation6 + $0x1], 1 }
 0x31a   :  { %1473 = vsyncpa [#allocation9], 1 }
 0x31b   :  { %1474 = vsyncpa [#allocation4], 1 }
 0x31c   :  { %1476 = vsyncpa [#allocation4 + $0x1], 1 }
 0x31d   :  { %1477 = vsyncpa [#allocation12], 1 }
 0x31e   :  { %1479 = vsyncpa [#allocation12 + $0x1], 1 }

</bundles_post_ra>
